<compile_context>
chip_gen: v7x
topology: tpu7x:2x2x1
jax: 0.10.0
libtpu: 0.0.40
codegen_flags: <defaults>
</compile_context>

<pallas_src>
import functools
import numpy as np

import jax
import jax.numpy as jnp
from jax.experimental import pallas as pl
from jax.experimental.pallas import tpu as pltpu

F32 = jnp.float32
BN_EPS = 1e-5

# ---- model dimensions (small, consistent with the module's structure) ------
NUM_OBJ_CLS = 16          # ROI_BOX_HEAD.NUM_CLASSES
NUM_REL_CLS = 10          # ROI_RELATION_HEAD.NUM_CLASSES
EMBED_DIM = 32            # word-embedding dim (200 in the original)
HIDDEN_DIM = 64           # CONTEXT_HIDDEN_DIM
IN_CHANNELS = 64          # roi feature dim fed to the context layer
POOLING_DIM = 128         # CONTEXT_POOLING_DIM (== MLP_HEAD_DIM -> no up_dim)
POS_DIM = 128             # pos_embed output dim (hard-coded 128 in LSTMContext)
GATE_DIM = 4 * HIDDEN_DIM  # fused i|f|g|o gate slab width (lane-dense, 256)


def _vmem():
    return pl.BlockSpec(memory_space=pltpu.MemorySpace.VMEM)


def _smem():
    return pl.BlockSpec(memory_space=pltpu.MemorySpace.SMEM)


def _sigmoid(x):
    # EUP tanh form: avoids the VPU divide of 1/(1+exp(-x)).
    return 0.5 * jnp.tanh(0.5 * x) + 0.5


# ============================ fused kernel ==================================
# TODO(synk): AlternatingHighwayLSTM (multi-layer, alternating direction,
#             highway connections) is replaced by a single-layer forward LSTM
#             per image; DecoderRNN's sequential greedy label decoding is
#             replaced by a linear classifier; Dropout layers are identity;
#             the left-to-right object re-ordering of LSTMContext is omitted.

def _motif_kernel(
    # data
    flags_ref,                                  # SMEM (N,) f32 keep-state flags
    roi_ref, logits_ref, boxinfo_ref, union_ref, sidx_ref, oidx_ref,
    # pos_embed (BN folded) + obj embed 1
    pw1_ref, pb1_ref, pw2_ref, pb2_ref, emb1_ref,
    # object-context LSTM (fused gate weights)
    owx_ref, owe_ref, owp_ref, owh_ref, ob_ref,
    # decoder + obj embed 2
    dec_w_ref, dec_b_ref, emb2_ref,
    # edge-context LSTM (fused gate weights)
    ewe_ref, ewx_ref, ewc_ref, ewh_ref, eb_ref,
    # post_emb, post_cat (row-split), rel_compress, freq bias
    pe_w_ref, pe_b_ref, wpc_sub_ref, wpc_obj_ref, bpc_ref,
    wrel_ref, brel_ref, freq_ref,
    # outputs
    obj_dists_out, rel_out,
    # scratch
    pos_sc, emb_sc, emb2_sc, octx_sc, ectx_sc, z_sc, edge_sc):

    n = roi_ref.shape[0]
    r = union_ref.shape[0]
    H = HIDDEN_DIM

    # --- pos_embed: Linear(9,32) [BN folded in] -> Linear(32,128) -> ReLU
    # TODO(synk): Dropout(0.1) inside pos_embed treated as identity.
    pe = jnp.dot(boxinfo_ref[...], pw1_ref[...], preferred_element_type=F32) + pb1_ref[...]
    pos_sc[...] = jnp.maximum(
        jnp.dot(pe, pw2_ref[...], preferred_element_type=F32) + pb2_ref[...], 0.0)

    # --- soft object-label embedding: softmax(predict_logits) @ obj_embed1 (exact softmax)
    lg = logits_ref[...]
    lg = lg - jnp.max(lg, axis=-1, keepdims=True)
    prob = jnp.exp(lg)
    prob = prob / jnp.sum(prob, axis=-1, keepdims=True)
    emb_sc[...] = jnp.dot(prob, emb1_ref[...], preferred_element_type=F32)

    roi = roi_ref[...]

    def run_lstm(wh_ref, out_ref):
        # z_sc already holds the fused input->gate projections for all rows.
        # The sequential part is a single (1,H)@(H,4H) dot per timestep.
        wh = wh_ref[...]                                  # hoisted (H, 4H) load

        def step(t, carry):
            h, c = carry
            keep = flags_ref[t]                           # 0.0 at sequence starts
            h = h * keep
            c = c * keep
            z = z_sc[pl.ds(t, 1), :] + jnp.dot(h, wh, preferred_element_type=F32)
            ig = _sigmoid(z[:, 0 * H:1 * H])
            fg = _sigmoid(z[:, 1 * H:2 * H])
            gg = jnp.tanh(z[:, 2 * H:3 * H])
            og = _sigmoid(z[:, 3 * H:4 * H])
            c = fg * c + ig * gg
            h = og * jnp.tanh(c)
            out_ref[pl.ds(t, 1), :] = h
            return (h, c)

        h0 = jnp.zeros((1, H), F32)
        c0 = jnp.zeros((1, H), F32)
        jax.lax.fori_loop(0, n, step, (h0, c0))

    # --- object-context LSTM, input = [roi | obj_embed | pos_embed]
    z_sc[...] = (
        jnp.dot(roi, owx_ref[...], preferred_element_type=F32)
        + jnp.dot(emb_sc[...], owe_ref[...], preferred_element_type=F32)
        + jnp.dot(pos_sc[...], owp_ref[...], preferred_element_type=F32)
        + ob_ref[...])
    run_lstm(owh_ref, octx_sc)

    # --- linear decoder -> obj_dists, obj_preds (skip background col 0), obj_embed2
    octx = octx_sc[...]
    dists = jnp.dot(octx, dec_w_ref[...], preferred_element_type=F32) + dec_b_ref[...]
    obj_dists_out[...] = dists
    col = jax.lax.broadcasted_iota(jnp.int32, (n, NUM_OBJ_CLS), 1)
    colf = col.astype(F32)
    masked = jnp.where(col == 0, -1e30, dists)
    mx = jnp.max(masked, axis=-1, keepdims=True)
    cand = jnp.where(masked == mx, colf, 1e9)
    pred_f = jnp.min(cand, axis=-1, keepdims=True)            # (n,1) argmax index (float)
    onehot = (colf == pred_f).astype(F32)                     # (n, NUM_OBJ_CLS)
    emb2_sc[...] = jnp.dot(onehot, emb2_ref[...], preferred_element_type=F32)

    # --- edge-context LSTM, input = [obj_embed2 | roi | obj_ctx]
    z_sc[...] = (
        jnp.dot(emb2_sc[...], ewe_ref[...], preferred_element_type=F32)
        + jnp.dot(roi, ewx_ref[...], preferred_element_type=F32)
        + jnp.dot(octx, ewc_ref[...], preferred_element_type=F32)
        + eb_ref[...])
    run_lstm(ewh_ref, ectx_sc)

    # --- post_emb: lane-dense (n, 2H); head = cols [0:H], tail = [H:2H]
    edge_sc[...] = (
        jnp.dot(ectx_sc[...], pe_w_ref[...], preferred_element_type=F32) + pe_b_ref[...])

    # --- relation head: pair gather via in-kernel one-hot selection matmuls
    ncol = jax.lax.broadcasted_iota(jnp.int32, (r, n), 1)
    s_sub = (ncol == sidx_ref[...]).astype(F32)                # (R, N)
    s_obj = (ncol == oidx_ref[...]).astype(F32)                # (R, N)
    sub_rep = jnp.dot(s_sub, edge_sc[...], preferred_element_type=F32)   # (R, 2H)
    obj_rep = jnp.dot(s_obj, edge_sc[...], preferred_element_type=F32)   # (R, 2H)
    # post_cat( cat(head[sub], tail[obj]) ) with row-split, zero-padded weights
    prod = (jnp.dot(sub_rep, wpc_sub_ref[...], preferred_element_type=F32)
            + jnp.dot(obj_rep, wpc_obj_ref[...], preferred_element_type=F32)
            + bpc_ref[...])                                              # (R, POOLING)
    prod = prod * union_ref[...]          # use_vision, union_single_not_match=False
    rel = jnp.dot(prod, wrel_ref[...], preferred_element_type=F32) + brel_ref[...]

    # frequency bias: pair class one-hot built from the in-kernel obj predictions
    psub = jnp.dot(s_sub, pred_f, preferred_element_type=F32)            # (R,1)
    pobj = jnp.dot(s_obj, pred_f, preferred_element_type=F32)            # (R,1)
    pidx = psub * float(NUM_OBJ_CLS) + pobj
    pcol = jax.lax.broadcasted_iota(
        jnp.int32, (r, NUM_OBJ_CLS * NUM_OBJ_CLS), 1).astype(F32)
    pair_onehot = (pcol == pidx).astype(F32)
    rel_out[...] = rel + jnp.dot(pair_onehot, freq_ref[...], preferred_element_type=F32)


def motif_kernel_call(params, keep_flags, roi, logits, boxinfo, union, sub_idx, obj_idx):
    n = roi.shape[0]
    r = union.shape[0]
    args = (keep_flags, roi, logits, boxinfo, union, sub_idx, obj_idx,
            params["pos_w1"], params["pos_b1"], params["pos_w2"], params["pos_b2"],
            params["obj_embed1_w"],
            params["olstm_wx"], params["olstm_we"], params["olstm_wp"],
            params["olstm_wh"], params["olstm_b"],
            params["dec_w"], params["dec_b"],
            params["obj_embed2_w"],
            params["elstm_we"], params["elstm_wx"], params["elstm_wc"],
            params["elstm_wh"], params["elstm_b"],
            params["post_emb_w"], params["post_emb_b"],
            params["post_cat_w_sub"], params["post_cat_w_obj"], params["post_cat_b"],
            params["rel_w"], params["rel_b"], params["freq_bias"])
    return pl.pallas_call(
        _motif_kernel,
        out_shape=(jax.ShapeDtypeStruct((n, NUM_OBJ_CLS), F32),
                   jax.ShapeDtypeStruct((r, NUM_REL_CLS), F32)),
        in_specs=[_smem()] + [_vmem()] * (len(args) - 1),
        out_specs=(_vmem(), _vmem()),
        scratch_shapes=[
            pltpu.VMEM((n, POS_DIM), F32),          # pos_embed
            pltpu.VMEM((n, EMBED_DIM), F32),        # obj_embed1
            pltpu.VMEM((n, EMBED_DIM), F32),        # obj_embed2
            pltpu.VMEM((n, HIDDEN_DIM), F32),       # obj_ctx
            pltpu.VMEM((n, HIDDEN_DIM), F32),       # edge_ctx
            pltpu.VMEM((n, GATE_DIM), F32),         # fused gate slab (i|f|g|o)
            pltpu.VMEM((n, 2 * HIDDEN_DIM), F32),   # post_emb output (edge_rep)
        ],
        compiler_params=pltpu.CompilerParams(vmem_limit_bytes=32 * 1024 * 1024),
    )(*args)


# ============================ forward glue ==================================

def encode_box_info(boxes, img_wh):
    # 9-dim box encoding used by LSTMContext (xyxy boxes).
    x1, y1, x2, y2 = boxes[:, 0:1], boxes[:, 1:2], boxes[:, 2:3], boxes[:, 3:4]
    w = x2 - x1 + 1.0
    h = y2 - y1 + 1.0
    xc = x1 + 0.5 * w
    yc = y1 + 0.5 * h
    wid = img_wh[:, 0:1]
    hei = img_wh[:, 1:2]
    return jnp.concatenate(
        [w / wid, h / hei, xc / wid, yc / hei, x1 / wid, y1 / hei,
         x2 / wid, y2 / hei, (w * h) / (wid * hei)], axis=-1).astype(F32)


@jax.jit
def _motif_forward_jit(params, roi, logits, boxes, img_wh, union, keep_flags,
                       sub_idx, obj_idx):
    boxinfo = encode_box_info(boxes, img_wh)
    return motif_kernel_call(params, keep_flags, roi, logits, boxinfo, union,
                             sub_idx, obj_idx)


def _pad_rows(x, n_rows, value=0.0):
    pad = n_rows - x.shape[0]
    if pad <= 0:
        return x
    return jnp.pad(x, ((0, pad),) + ((0, 0),) * (x.ndim - 1), constant_values=value)


def _round8(n):
    return max(8, ((int(n) + 7) // 8) * 8)


def motif_predictor_forward(params, roi_features, predict_logits, boxes, img_wh,
                            union_features, rel_pair_idxs, num_objs):
    """Returns (obj_dists list, rel_dists list, add_losses) like MotifPredictor."""
    num_rels = [int(r.shape[0]) for r in rel_pair_idxs]
    n_total = int(sum(num_objs))
    r_total = int(sum(num_rels))
    n_pad = _round8(n_total)
    r_pad = _round8(r_total)

    # Runtime index plumbing (device arrays -> no per-scene recompilation for a
    # given padded (n_pad, r_pad) bucket).
    offsets = np.cumsum([0] + list(num_objs[:-1]))
    sub_idx = np.concatenate([np.asarray(pi)[:, 0] + int(o)
                              for pi, o in zip(rel_pair_idxs, offsets)]).astype(np.int32)
    obj_idx = np.concatenate([np.asarray(pi)[:, 1] + int(o)
                              for pi, o in zip(rel_pair_idxs, offsets)]).astype(np.int32)
    sub_idx = np.pad(sub_idx, (0, r_pad - r_total)).reshape(r_pad, 1)
    obj_idx = np.pad(obj_idx, (0, r_pad - r_total)).reshape(r_pad, 1)

    keep = np.ones((n_pad,), np.float32)      # 0.0 at the first object of each image
    pos = 0
    for no in num_objs:
        keep[pos] = 0.0
        pos += int(no)
    if n_total < n_pad:
        keep[n_total] = 0.0

    roi_p = _pad_rows(roi_features, n_pad)
    logits_p = _pad_rows(predict_logits, n_pad)
    boxes_p = _pad_rows(boxes, n_pad)
    imgwh_p = _pad_rows(img_wh, n_pad, 1.0)
    union_p = _pad_rows(union_features, r_pad)

    obj_dists_all, rel_dists_all = _motif_forward_jit(
        params, roi_p, logits_p, boxes_p, imgwh_p, union_p,
        jnp.asarray(keep), jnp.asarray(sub_idx), jnp.asarray(obj_idx))

    obj_dists_all = obj_dists_all[:n_total]
    rel_dists_all = rel_dists_all[:r_total]
    obj_dists = jnp.split(obj_dists_all, np.cumsum(num_objs)[:-1].tolist(), axis=0)
    rel_dists = jnp.split(rel_dists_all, np.cumsum(num_rels)[:-1].tolist(), axis=0)
    add_losses = {}
    return obj_dists, rel_dists, add_losses


# ============================ parameter init ================================

def build_params(seed=0):
    key = [jax.random.PRNGKey(seed)]

    def nxt():
        key[0], k = jax.random.split(key[0])
        return k

    def w(shape, std=0.05):
        return (jax.random.normal(nxt(), shape, F32) * std).astype(F32)

    def gate_w(d_in):
        # fused gate-major layout along the output axis: [i | f | g | o]
        return w((d_in, GATE_DIM))

    p = {}
    # pos_embed: Linear(9,32) -> BatchNorm1d(32) -> Linear(32,128) -> ReLU -> Dropout
    # BN folded into the first Linear using eval-mode running statistics.
    w1 = w((9, 32)); b1 = w((1, 32), 0.01)
    bn_g = jnp.ones((1, 32), F32); bn_b = jnp.zeros((1, 32), F32)
    bn_mean = jnp.zeros((1, 32), F32); bn_var = jnp.ones((1, 32), F32)
    scale = bn_g * jax.lax.rsqrt(bn_var + BN_EPS)
    p["pos_w1"] = (w1 * scale).astype(F32)
    p["pos_b1"] = ((b1 - bn_mean) * scale + bn_b).astype(F32)
    p["pos_w2"] = w((32, POS_DIM)); p["pos_b2"] = w((1, POS_DIM), 0.01)
    # word embeddings
    p["obj_embed1_w"] = w((NUM_OBJ_CLS, EMBED_DIM), 0.1)
    p["obj_embed2_w"] = w((NUM_OBJ_CLS, EMBED_DIM), 0.1)
    # object-context LSTM (input = roi | obj_embed | pos_embed), fused gates
    p["olstm_wx"] = gate_w(IN_CHANNELS)
    p["olstm_we"] = gate_w(EMBED_DIM)
    p["olstm_wp"] = gate_w(POS_DIM)
    p["olstm_wh"] = gate_w(HIDDEN_DIM)
    p["olstm_b"] = jnp.zeros((1, GATE_DIM), F32)
    # linear decoder (stand-in for DecoderRNN)
    p["dec_w"] = w((HIDDEN_DIM, NUM_OBJ_CLS)); p["dec_b"] = w((1, NUM_OBJ_CLS), 0.01)
    # edge-context LSTM (input = obj_embed2 | roi | obj_ctx), fused gates
    p["elstm_we"] = gate_w(EMBED_DIM)
    p["elstm_wx"] = gate_w(IN_CHANNELS)
    p["elstm_wc"] = gate_w(HIDDEN_DIM)
    p["elstm_wh"] = gate_w(HIDDEN_DIM)
    p["elstm_b"] = jnp.zeros((1, GATE_DIM), F32)
    # post_emb: Linear(hidden, 2*hidden); head = cols [0:64], tail = cols [64:128]
    p["post_emb_w"] = w((HIDDEN_DIM, 2 * HIDDEN_DIM))
    p["post_emb_b"] = w((1, 2 * HIDDEN_DIM), 0.01)
    # post_cat: Linear(2*hidden, pooling_dim), row-split into head/tail halves and
    # zero-padded back to 2*hidden rows so the kernel never lane-slices edge_rep.
    post_cat_w = np.asarray(w((2 * HIDDEN_DIM, POOLING_DIM)))
    wsub = np.zeros_like(post_cat_w); wsub[:HIDDEN_DIM] = post_cat_w[:HIDDEN_DIM]
    wobj = np.zeros_like(post_cat_w); wobj[HIDDEN_DIM:] = post_cat_w[HIDDEN_DIM:]
    p["post_cat_w_sub"] = jnp.asarray(wsub)
    p["post_cat_w_obj"] = jnp.asarray(wobj)
    p["post_cat_b"] = w((1, POOLING_DIM), 0.01)
    # rel_compress + FrequencyBias
    p["rel_w"] = w((POOLING_DIM, NUM_REL_CLS)); p["rel_b"] = w((1, NUM_REL_CLS), 0.01)
    # TODO(synk): FrequencyBias table should come from dataset statistics; random here.
    p["freq_bias"] = w((NUM_OBJ_CLS * NUM_OBJ_CLS, NUM_REL_CLS), 0.1)
    return p


# ================================ main ======================================

if __name__ == "__main__":
    num_objs = [5, 3]                                    # objects per image
    rel_pair_idxs = [
        np.array([[0, 1], [1, 2], [2, 3], [3, 4]], np.int32),
        np.array([[0, 1], [2, 0]], np.int32),
    ]
    n_total = sum(num_objs)
    r_total = sum(int(r.shape[0]) for r in rel_pair_idxs)

    params = build_params(0)

    key = jax.random.PRNGKey(0)
    k1, k2, k3, k4 = jax.random.split(key, 4)
    roi_features = jax.random.normal(k1, (n_total, IN_CHANNELS), F32)
    predict_logits = jax.random.normal(k2, (n_total, NUM_OBJ_CLS), F32)
    raw = jax.random.uniform(k3, (n_total, 4), dtype=F32)
    bx1 = raw[:, 0:1] * 30.0
    by1 = raw[:, 1:2] * 20.0
    bx2 = bx1 + 5.0 + raw[:, 2:3] * 25.0
    by2 = by1 + 5.0 + raw[:, 3:4] * 20.0
    boxes = jnp.concatenate([bx1, by1, bx2, by2], axis=-1)           # xyxy
    img_wh = jnp.tile(jnp.asarray([[64.0, 48.0]], F32), (n_total, 1))
    union_features = jax.random.normal(k4, (r_total, POOLING_DIM), F32)

    obj_dists, rel_dists, add_losses = motif_predictor_forward(
        params, roi_features, predict_logits, boxes, img_wh,
        union_features, rel_pair_idxs, num_objs)

    jax.block_until_ready((obj_dists, rel_dists))
    assert [tuple(d.shape) for d in obj_dists] == [(5, NUM_OBJ_CLS), (3, NUM_OBJ_CLS)]
    assert [tuple(d.shape) for d in rel_dists] == [(4, NUM_REL_CLS), (2, NUM_REL_CLS)]
    print("KERNEL_OK")
</pallas_src>

<mosaic_0001>
module attributes {stable_mosaic.version = 11 : i64} {
  func.func @_motif_kernel(%arg0: memref<8xf32, #tpu.memory_space<smem>>, %arg1: memref<8x64xf32, #tpu.memory_space<vmem>>, %arg2: memref<8x16xf32, #tpu.memory_space<vmem>>, %arg3: memref<8x9xf32, #tpu.memory_space<vmem>>, %arg4: memref<8x128xf32, #tpu.memory_space<vmem>>, %arg5: memref<8x1xi32, #tpu.memory_space<vmem>>, %arg6: memref<8x1xi32, #tpu.memory_space<vmem>>, %arg7: memref<9x32xf32, #tpu.memory_space<vmem>>, %arg8: memref<1x32xf32, #tpu.memory_space<vmem>>, %arg9: memref<32x128xf32, #tpu.memory_space<vmem>>, %arg10: memref<1x128xf32, #tpu.memory_space<vmem>>, %arg11: memref<16x32xf32, #tpu.memory_space<vmem>>, %arg12: memref<64x256xf32, #tpu.memory_space<vmem>>, %arg13: memref<32x256xf32, #tpu.memory_space<vmem>>, %arg14: memref<128x256xf32, #tpu.memory_space<vmem>>, %arg15: memref<64x256xf32, #tpu.memory_space<vmem>>, %arg16: memref<1x256xf32, #tpu.memory_space<vmem>>, %arg17: memref<64x16xf32, #tpu.memory_space<vmem>>, %arg18: memref<1x16xf32, #tpu.memory_space<vmem>>, %arg19: memref<16x32xf32, #tpu.memory_space<vmem>>, %arg20: memref<32x256xf32, #tpu.memory_space<vmem>>, %arg21: memref<64x256xf32, #tpu.memory_space<vmem>>, %arg22: memref<64x256xf32, #tpu.memory_space<vmem>>, %arg23: memref<64x256xf32, #tpu.memory_space<vmem>>, %arg24: memref<1x256xf32, #tpu.memory_space<vmem>>, %arg25: memref<64x128xf32, #tpu.memory_space<vmem>>, %arg26: memref<1x128xf32, #tpu.memory_space<vmem>>, %arg27: memref<128x128xf32, #tpu.memory_space<vmem>>, %arg28: memref<128x128xf32, #tpu.memory_space<vmem>>, %arg29: memref<1x128xf32, #tpu.memory_space<vmem>>, %arg30: memref<128x10xf32, #tpu.memory_space<vmem>>, %arg31: memref<1x10xf32, #tpu.memory_space<vmem>>, %arg32: memref<256x10xf32, #tpu.memory_space<vmem>>, %arg33: memref<8x16xf32, #tpu.memory_space<vmem>>, %arg34: memref<8x10xf32, #tpu.memory_space<vmem>>, %arg35: memref<8x128xf32, #tpu.memory_space<vmem>>, %arg36: memref<8x32xf32, #tpu.memory_space<vmem>>, %arg37: memref<8x32xf32, #tpu.memory_space<vmem>>, %arg38: memref<8x64xf32, #tpu.memory_space<vmem>>, %arg39: memref<8x64xf32, #tpu.memory_space<vmem>>, %arg40: memref<8x256xf32, #tpu.memory_space<vmem>>, %arg41: memref<8x128xf32, #tpu.memory_space<vmem>>) attributes {dimension_semantics = [], scalar_prefetch = 0 : i64, scratch_operands = 7 : i64, tpu.core_type = #tpu.core_type<tc>} {
    %c0 = arith.constant 0 : index
    %c0_0 = arith.constant 0 : index
    %0 = vector.load %arg3[%c0, %c0_0] : memref<8x9xf32, #tpu.memory_space<vmem>>, vector<8x9xf32>
    %c0_1 = arith.constant 0 : index
    %c0_2 = arith.constant 0 : index
    %1 = vector.load %arg7[%c0_1, %c0_2] : memref<9x32xf32, #tpu.memory_space<vmem>>, vector<9x32xf32>
    %cst = arith.constant dense<0.000000e+00> : vector<8x32xf32>
    %2 = tpu.matmul %0, %1, %cst {dimension_numbers = #tpu.dot_dimension_numbers<[1], [0], [0], [1], [0, 0, 1, 1], [], []>} : vector<8x9xf32>, vector<9x32xf32>, vector<8x32xf32> -> vector<8x32xf32>
    %c0_3 = arith.constant 0 : index
    %c0_4 = arith.constant 0 : index
    %3 = vector.load %arg8[%c0_3, %c0_4] : memref<1x32xf32, #tpu.memory_space<vmem>>, vector<1x32xf32>
    %4 = vector.broadcast %3 : vector<1x32xf32> to vector<8x32xf32>
    %5 = arith.addf %2, %4 : vector<8x32xf32>
    %c0_5 = arith.constant 0 : index
    %c0_6 = arith.constant 0 : index
    %6 = vector.load %arg9[%c0_5, %c0_6] : memref<32x128xf32, #tpu.memory_space<vmem>>, vector<32x128xf32>
    %cst_7 = arith.constant dense<0.000000e+00> : vector<8x128xf32>
    %7 = tpu.matmul %5, %6, %cst_7 {dimension_numbers = #tpu.dot_dimension_numbers<[1], [0], [0], [1], [0, 0, 1, 1], [], []>} : vector<8x32xf32>, vector<32x128xf32>, vector<8x128xf32> -> vector<8x128xf32>
    %c0_8 = arith.constant 0 : index
    %c0_9 = arith.constant 0 : index
    %8 = vector.load %arg10[%c0_8, %c0_9] : memref<1x128xf32, #tpu.memory_space<vmem>>, vector<1x128xf32>
    %9 = vector.broadcast %8 : vector<1x128xf32> to vector<8x128xf32>
    %10 = arith.addf %7, %9 : vector<8x128xf32>
    %cst_10 = arith.constant 0.000000e+00 : f32
    %11 = vector.broadcast %cst_10 : f32 to vector<8x128xf32>
    %12 = arith.maximumf %10, %11 : vector<8x128xf32>
    %c0_11 = arith.constant 0 : index
    %c0_12 = arith.constant 0 : index
    %13 = vector.load %arg35[%c0_11, %c0_12] : memref<8x128xf32, #tpu.memory_space<vmem>>, vector<8x128xf32>
    tpu.vector_store %arg35[%c0_11, %c0_12], %12 {strides = array<i32>} : memref<8x128xf32, #tpu.memory_space<vmem>>, vector<8x128xf32>,
    %c0_13 = arith.constant 0 : index
    %c0_14 = arith.constant 0 : index
    %14 = vector.load %arg2[%c0_13, %c0_14] : memref<8x16xf32, #tpu.memory_space<vmem>>, vector<8x16xf32>
    %cst_15 = arith.constant dense<0xFF800000> : vector<8xf32>
    %15 = vector.multi_reduction <maximumf>, %14, %cst_15 [1] : vector<8x16xf32> to vector<8xf32>
    %16 = vector.shape_cast %15 : vector<8xf32> to vector<8x1xf32>
    %17 = vector.broadcast %16 : vector<8x1xf32> to vector<8x16xf32>
    %18 = arith.subf %14, %17 : vector<8x16xf32>
    %19 = math.exp %18 : vector<8x16xf32>
    %cst_16 = arith.constant dense<0.000000e+00> : vector<8xf32>
    %20 = vector.multi_reduction <add>, %19, %cst_16 [1] : vector<8x16xf32> to vector<8xf32>
    %21 = vector.shape_cast %20 : vector<8xf32> to vector<8x1xf32>
    %22 = vector.broadcast %21 : vector<8x1xf32> to vector<8x16xf32>
    %23 = arith.divf %19, %22 : vector<8x16xf32>
    %c0_17 = arith.constant 0 : index
    %c0_18 = arith.constant 0 : index
    %24 = vector.load %arg11[%c0_17, %c0_18] : memref<16x32xf32, #tpu.memory_space<vmem>>, vector<16x32xf32>
    %cst_19 = arith.constant dense<0.000000e+00> : vector<8x32xf32>
    %25 = tpu.matmul %23, %24, %cst_19 {dimension_numbers = #tpu.dot_dimension_numbers<[1], [0], [0], [1], [0, 0, 1, 1], [], []>} : vector<8x16xf32>, vector<16x32xf32>, vector<8x32xf32> -> vector<8x32xf32>
    %c0_20 = arith.constant 0 : index
    %c0_21 = arith.constant 0 : index
    %26 = vector.load %arg36[%c0_20, %c0_21] : memref<8x32xf32, #tpu.memory_space<vmem>>, vector<8x32xf32>
    tpu.vector_store %arg36[%c0_20, %c0_21], %25 {strides = array<i32>} : memref<8x32xf32, #tpu.memory_space<vmem>>, vector<8x32xf32>,
    %c0_22 = arith.constant 0 : index
    %c0_23 = arith.constant 0 : index
    %27 = vector.load %arg1[%c0_22, %c0_23] : memref<8x64xf32, #tpu.memory_space<vmem>>, vector<8x64xf32>
    %c0_24 = arith.constant 0 : index
    %c0_25 = arith.constant 0 : index
    %28 = vector.load %arg12[%c0_24, %c0_25] : memref<64x256xf32, #tpu.memory_space<vmem>>, vector<64x256xf32>
    %cst_26 = arith.constant dense<0.000000e+00> : vector<8x256xf32>
    %29 = tpu.matmul %27, %28, %cst_26 {dimension_numbers = #tpu.dot_dimension_numbers<[1], [0], [0], [1], [0, 0, 1, 1], [], []>} : vector<8x64xf32>, vector<64x256xf32>, vector<8x256xf32> -> vector<8x256xf32>
    %c0_27 = arith.constant 0 : index
    %c0_28 = arith.constant 0 : index
    %30 = vector.load %arg36[%c0_27, %c0_28] : memref<8x32xf32, #tpu.memory_space<vmem>>, vector<8x32xf32>
    %c0_29 = arith.constant 0 : index
    %c0_30 = arith.constant 0 : index
    %31 = vector.load %arg13[%c0_29, %c0_30] : memref<32x256xf32, #tpu.memory_space<vmem>>, vector<32x256xf32>
    %cst_31 = arith.constant dense<0.000000e+00> : vector<8x256xf32>
    %32 = tpu.matmul %30, %31, %cst_31 {dimension_numbers = #tpu.dot_dimension_numbers<[1], [0], [0], [1], [0, 0, 1, 1], [], []>} : vector<8x32xf32>, vector<32x256xf32>, vector<8x256xf32> -> vector<8x256xf32>
    %33 = arith.addf %29, %32 : vector<8x256xf32>
    %c0_32 = arith.constant 0 : index
    %c0_33 = arith.constant 0 : index
    %34 = vector.load %arg35[%c0_32, %c0_33] : memref<8x128xf32, #tpu.memory_space<vmem>>, vector<8x128xf32>
    %c0_34 = arith.constant 0 : index
    %c0_35 = arith.constant 0 : index
    %35 = vector.load %arg14[%c0_34, %c0_35] : memref<128x256xf32, #tpu.memory_space<vmem>>, vector<128x256xf32>
    %cst_36 = arith.constant dense<0.000000e+00> : vector<8x256xf32>
    %36 = tpu.matmul %34, %35, %cst_36 {dimension_numbers = #tpu.dot_dimension_numbers<[1], [0], [0], [1], [0, 0, 1, 1], [], []>} : vector<8x128xf32>, vector<128x256xf32>, vector<8x256xf32> -> vector<8x256xf32>
    %37 = arith.addf %33, %36 : vector<8x256xf32>
    %c0_37 = arith.constant 0 : index
    %c0_38 = arith.constant 0 : index
    %38 = vector.load %arg16[%c0_37, %c0_38] : memref<1x256xf32, #tpu.memory_space<vmem>>, vector<1x256xf32>
    %39 = vector.broadcast %38 : vector<1x256xf32> to vector<8x256xf32>
    %40 = arith.addf %37, %39 : vector<8x256xf32>
    %c0_39 = arith.constant 0 : index
    %c0_40 = arith.constant 0 : index
    %41 = vector.load %arg40[%c0_39, %c0_40] : memref<8x256xf32, #tpu.memory_space<vmem>>, vector<8x256xf32>
    tpu.vector_store %arg40[%c0_39, %c0_40], %40 {strides = array<i32>} : memref<8x256xf32, #tpu.memory_space<vmem>>, vector<8x256xf32>,
    %c0_41 = arith.constant 0 : index
    %c0_42 = arith.constant 0 : index
    %42 = vector.load %arg15[%c0_41, %c0_42] : memref<64x256xf32, #tpu.memory_space<vmem>>, vector<64x256xf32>
    %cst_43 = arith.constant 0.000000e+00 : f32
    %43 = vector.broadcast %cst_43 : f32 to vector<1x64xf32>
    %cst_44 = arith.constant 0.000000e+00 : f32
    %44 = vector.broadcast %cst_44 : f32 to vector<1x64xf32>
    %c0_i32 = arith.constant 0 : i32
    %c8_i32 = arith.constant 8 : i32
    %45 = arith.addi %c0_i32, %c8_i32 : i32
    %c1_i32 = arith.constant 1 : i32
    %46:2 = scf.for %arg42 = %c0_i32 to %45 step %c1_i32 iter_args(%arg43 = %43, %arg44 = %44) -> (vector<1x64xf32>, vector<1x64xf32>)  : i32 {
      %145 = arith.index_cast %arg42 : i32 to index
      %146 = memref.load %arg0[%145] : memref<8xf32, #tpu.memory_space<smem>>
      %147 = vector.broadcast %146 : f32 to vector<1x64xf32>
      %148 = arith.mulf %arg43, %147 : vector<1x64xf32>
      %149 = vector.broadcast %146 : f32 to vector<1x64xf32>
      %150 = arith.mulf %arg44, %149 : vector<1x64xf32>
      %151 = arith.index_cast %arg42 : i32 to index
      %c0_130 = arith.constant 0 : index
      %152 = vector.load %arg40[%151, %c0_130] : memref<8x256xf32, #tpu.memory_space<vmem>>, vector<1x256xf32>
      %cst_131 = arith.constant dense<0.000000e+00> : vector<1x256xf32>
      %153 = tpu.matmul %148, %42, %cst_131 {dimension_numbers = #tpu.dot_dimension_numbers<[1], [0], [0], [1], [0, 0, 1, 1], [], []>} : vector<1x64xf32>, vector<64x256xf32>, vector<1x256xf32> -> vector<1x256xf32>
      %154 = arith.addf %152, %153 : vector<1x256xf32>
      %155 = vector.extract_strided_slice %154 {offsets = [0, 0], sizes = [1, 64], strides = [1, 1]} : vector<1x256xf32> to vector<1x64xf32>
      %cst_132 = arith.constant 5.000000e-01 : f32
      %156 = vector.broadcast %cst_132 : f32 to vector<1x64xf32>
      %157 = arith.mulf %156, %155 : vector<1x64xf32>
      %158 = math.tanh %157 : vector<1x64xf32>
      %cst_133 = arith.constant 5.000000e-01 : f32
      %159 = vector.broadcast %cst_133 : f32 to vector<1x64xf32>
      %160 = arith.mulf %159, %158 : vector<1x64xf32>
      %cst_134 = arith.constant 5.000000e-01 : f32
      %161 = vector.broadcast %cst_134 : f32 to vector<1x64xf32>
      %162 = arith.addf %160, %161 : vector<1x64xf32>
      %163 = vector.extract_strided_slice %154 {offsets = [0, 64], sizes = [1, 64], strides = [1, 1]} : vector<1x256xf32> to vector<1x64xf32>
      %cst_135 = arith.constant 5.000000e-01 : f32
      %164 = vector.broadcast %cst_135 : f32 to vector<1x64xf32>
      %165 = arith.mulf %164, %163 : vector<1x64xf32>
      %166 = math.tanh %165 : vector<1x64xf32>
      %cst_136 = arith.constant 5.000000e-01 : f32
      %167 = vector.broadcast %cst_136 : f32 to vector<1x64xf32>
      %168 = arith.mulf %167, %166 : vector<1x64xf32>
      %cst_137 = arith.constant 5.000000e-01 : f32
      %169 = vector.broadcast %cst_137 : f32 to vector<1x64xf32>
      %170 = arith.addf %168, %169 : vector<1x64xf32>
      %171 = vector.extract_strided_slice %154 {offsets = [0, 128], sizes = [1, 64], strides = [1, 1]} : vector<1x256xf32> to vector<1x64xf32>
      %172 = math.tanh %171 : vector<1x64xf32>
      %173 = vector.extract_strided_slice %154 {offsets = [0, 192], sizes = [1, 64], strides = [1, 1]} : vector<1x256xf32> to vector<1x64xf32>
      %cst_138 = arith.constant 5.000000e-01 : f32
      %174 = vector.broadcast %cst_138 : f32 to vector<1x64xf32>
      %175 = arith.mulf %174, %173 : vector<1x64xf32>
      %176 = math.tanh %175 : vector<1x64xf32>
      %cst_139 = arith.constant 5.000000e-01 : f32
      %177 = vector.broadcast %cst_139 : f32 to vector<1x64xf32>
      %178 = arith.mulf %177, %176 : vector<1x64xf32>
      %cst_140 = arith.constant 5.000000e-01 : f32
      %179 = vector.broadcast %cst_140 : f32 to vector<1x64xf32>
      %180 = arith.addf %178, %179 : vector<1x64xf32>
      %181 = arith.mulf %170, %150 : vector<1x64xf32>
      %182 = arith.mulf %162, %172 : vector<1x64xf32>
      %183 = arith.addf %181, %182 : vector<1x64xf32>
      %184 = math.tanh %183 : vector<1x64xf32>
      %185 = arith.mulf %180, %184 : vector<1x64xf32>
      %186 = arith.index_cast %arg42 : i32 to index
      %c0_141 = arith.constant 0 : index
      %187 = vector.load %arg38[%186, %c0_141] : memref<8x64xf32, #tpu.memory_space<vmem>>, vector<1x64xf32>
      tpu.vector_store %arg38[%186, %c0_141], %185 {strides = array<i32>} : memref<8x64xf32, #tpu.memory_space<vmem>>, vector<1x64xf32>,
      scf.yield %185, %183 : vector<1x64xf32>, vector<1x64xf32>
    }
    %c8_i32_45 = arith.constant 8 : i32
    %c0_46 = arith.constant 0 : index
    %c0_47 = arith.constant 0 : index
    %47 = vector.load %arg38[%c0_46, %c0_47] : memref<8x64xf32, #tpu.memory_space<vmem>>, vector<8x64xf32>
    %c0_48 = arith.constant 0 : index
    %c0_49 = arith.constant 0 : index
    %48 = vector.load %arg17[%c0_48, %c0_49] : memref<64x16xf32, #tpu.memory_space<vmem>>, vector<64x16xf32>
    %cst_50 = arith.constant dense<0.000000e+00> : vector<8x16xf32>
    %49 = tpu.matmul %47, %48, %cst_50 {dimension_numbers = #tpu.dot_dimension_numbers<[1], [0], [0], [1], [0, 0, 1, 1], [], []>} : vector<8x64xf32>, vector<64x16xf32>, vector<8x16xf32> -> vector<8x16xf32>
    %c0_51 = arith.constant 0 : index
    %c0_52 = arith.constant 0 : index
    %50 = vector.load %arg18[%c0_51, %c0_52] : memref<1x16xf32, #tpu.memory_space<vmem>>, vector<1x16xf32>
    %51 = vector.broadcast %50 : vector<1x16xf32> to vector<8x16xf32>
    %52 = arith.addf %49, %51 : vector<8x16xf32>
    %c0_53 = arith.constant 0 : index
    %c0_54 = arith.constant 0 : index
    %53 = vector.load %arg33[%c0_53, %c0_54] : memref<8x16xf32, #tpu.memory_space<vmem>>, vector<8x16xf32>
    tpu.vector_store %arg33[%c0_53, %c0_54], %52 {strides = array<i32>} : memref<8x16xf32, #tpu.memory_space<vmem>>, vector<8x16xf32>,
    %54 = tpu.iota {dimensions = array<i32: 1>} : vector<8x16xi32>
    %55 = arith.sitofp %54 : vector<8x16xi32> to vector<8x16xf32>
    %c0_i32_55 = arith.constant 0 : i32
    %56 = vector.broadcast %c0_i32_55 : i32 to vector<8x16xi32>
    %57 = arith.cmpi eq, %54, %56 : vector<8x16xi32>
    %cst_56 = arith.constant -1.000000e+30 : f32
    %58 = vector.broadcast %cst_56 : f32 to vector<8x16xf32>
    %59 = arith.select %57, %58, %52 : vector<8x16xi1>, vector<8x16xf32>
    %cst_57 = arith.constant dense<0xFF800000> : vector<8xf32>
    %60 = vector.multi_reduction <maximumf>, %59, %cst_57 [1] : vector<8x16xf32> to vector<8xf32>
    %61 = vector.shape_cast %60 : vector<8xf32> to vector<8x1xf32>
    %62 = vector.broadcast %61 : vector<8x1xf32> to vector<8x16xf32>
    %63 = arith.cmpf oeq, %59, %62 : vector<8x16xf32>
    %cst_58 = arith.constant 1.000000e+09 : f32
    %64 = vector.broadcast %cst_58 : f32 to vector<8x16xf32>
    %65 = arith.select %63, %55, %64 : vector<8x16xi1>, vector<8x16xf32>
    %cst_59 = arith.constant dense<0x7F800000> : vector<8xf32>
    %66 = vector.multi_reduction <minimumf>, %65, %cst_59 [1] : vector<8x16xf32> to vector<8xf32>
    %67 = vector.shape_cast %66 : vector<8xf32> to vector<8x1xf32>
    %68 = vector.broadcast %67 : vector<8x1xf32> to vector<8x16xf32>
    %69 = arith.cmpf oeq, %55, %68 : vector<8x16xf32>
    %70 = arith.extui %69 : vector<8x16xi1> to vector<8x16xi32>
    %71 = arith.sitofp %70 : vector<8x16xi32> to vector<8x16xf32>
    %c0_60 = arith.constant 0 : index
    %c0_61 = arith.constant 0 : index
    %72 = vector.load %arg19[%c0_60, %c0_61] : memref<16x32xf32, #tpu.memory_space<vmem>>, vector<16x32xf32>
    %cst_62 = arith.constant dense<0.000000e+00> : vector<8x32xf32>
    %73 = tpu.matmul %71, %72, %cst_62 {dimension_numbers = #tpu.dot_dimension_numbers<[1], [0], [0], [1], [0, 0, 1, 1], [], []>} : vector<8x16xf32>, vector<16x32xf32>, vector<8x32xf32> -> vector<8x32xf32>
    %c0_63 = arith.constant 0 : index
    %c0_64 = arith.constant 0 : index
    %74 = vector.load %arg37[%c0_63, %c0_64] : memref<8x32xf32, #tpu.memory_space<vmem>>, vector<8x32xf32>
    tpu.vector_store %arg37[%c0_63, %c0_64], %73 {strides = array<i32>} : memref<8x32xf32, #tpu.memory_space<vmem>>, vector<8x32xf32>,
    %c0_65 = arith.constant 0 : index
    %c0_66 = arith.constant 0 : index
    %75 = vector.load %arg37[%c0_65, %c0_66] : memref<8x32xf32, #tpu.memory_space<vmem>>, vector<8x32xf32>
    %c0_67 = arith.constant 0 : index
    %c0_68 = arith.constant 0 : index
    %76 = vector.load %arg20[%c0_67, %c0_68] : memref<32x256xf32, #tpu.memory_space<vmem>>, vector<32x256xf32>
    %cst_69 = arith.constant dense<0.000000e+00> : vector<8x256xf32>
    %77 = tpu.matmul %75, %76, %cst_69 {dimension_numbers = #tpu.dot_dimension_numbers<[1], [0], [0], [1], [0, 0, 1, 1], [], []>} : vector<8x32xf32>, vector<32x256xf32>, vector<8x256xf32> -> vector<8x256xf32>
    %c0_70 = arith.constant 0 : index
    %c0_71 = arith.constant 0 : index
    %78 = vector.load %arg21[%c0_70, %c0_71] : memref<64x256xf32, #tpu.memory_space<vmem>>, vector<64x256xf32>
    %cst_72 = arith.constant dense<0.000000e+00> : vector<8x256xf32>
    %79 = tpu.matmul %27, %78, %cst_72 {dimension_numbers = #tpu.dot_dimension_numbers<[1], [0], [0], [1], [0, 0, 1, 1], [], []>} : vector<8x64xf32>, vector<64x256xf32>, vector<8x256xf32> -> vector<8x256xf32>
    %80 = arith.addf %77, %79 : vector<8x256xf32>
    %c0_73 = arith.constant 0 : index
    %c0_74 = arith.constant 0 : index
    %81 = vector.load %arg22[%c0_73, %c0_74] : memref<64x256xf32, #tpu.memory_space<vmem>>, vector<64x256xf32>
    %cst_75 = arith.constant dense<0.000000e+00> : vector<8x256xf32>
    %82 = tpu.matmul %47, %81, %cst_75 {dimension_numbers = #tpu.dot_dimension_numbers<[1], [0], [0], [1], [0, 0, 1, 1], [], []>} : vector<8x64xf32>, vector<64x256xf32>, vector<8x256xf32> -> vector<8x256xf32>
    %83 = arith.addf %80, %82 : vector<8x256xf32>
    %c0_76 = arith.constant 0 : index
    %c0_77 = arith.constant 0 : index
    %84 = vector.load %arg24[%c0_76, %c0_77] : memref<1x256xf32, #tpu.memory_space<vmem>>, vector<1x256xf32>
    %85 = vector.broadcast %84 : vector<1x256xf32> to vector<8x256xf32>
    %86 = arith.addf %83, %85 : vector<8x256xf32>
    %c0_78 = arith.constant 0 : index
    %c0_79 = arith.constant 0 : index
    %87 = vector.load %arg40[%c0_78, %c0_79] : memref<8x256xf32, #tpu.memory_space<vmem>>, vector<8x256xf32>
    tpu.vector_store %arg40[%c0_78, %c0_79], %86 {strides = array<i32>} : memref<8x256xf32, #tpu.memory_space<vmem>>, vector<8x256xf32>,
    %c0_80 = arith.constant 0 : index
    %c0_81 = arith.constant 0 : index
    %88 = vector.load %arg23[%c0_80, %c0_81] : memref<64x256xf32, #tpu.memory_space<vmem>>, vector<64x256xf32>
    %cst_82 = arith.constant 0.000000e+00 : f32
    %89 = vector.broadcast %cst_82 : f32 to vector<1x64xf32>
    %cst_83 = arith.constant 0.000000e+00 : f32
    %90 = vector.broadcast %cst_83 : f32 to vector<1x64xf32>
    %c0_i32_84 = arith.constant 0 : i32
    %c8_i32_85 = arith.constant 8 : i32
    %91 = arith.addi %c0_i32_84, %c8_i32_85 : i32
    %c1_i32_86 = arith.constant 1 : i32
    %92:2 = scf.for %arg42 = %c0_i32_84 to %91 step %c1_i32_86 iter_args(%arg43 = %89, %arg44 = %90) -> (vector<1x64xf32>, vector<1x64xf32>)  : i32 {
      %145 = arith.index_cast %arg42 : i32 to index
      %146 = memref.load %arg0[%145] : memref<8xf32, #tpu.memory_space<smem>>
      %147 = vector.broadcast %146 : f32 to vector<1x64xf32>
      %148 = arith.mulf %arg43, %147 : vector<1x64xf32>
      %149 = vector.broadcast %146 : f32 to vector<1x64xf32>
      %150 = arith.mulf %arg44, %149 : vector<1x64xf32>
      %151 = arith.index_cast %arg42 : i32 to index
      %c0_130 = arith.constant 0 : index
      %152 = vector.load %arg40[%151, %c0_130] : memref<8x256xf32, #tpu.memory_space<vmem>>, vector<1x256xf32>
      %cst_131 = arith.constant dense<0.000000e+00> : vector<1x256xf32>
      %153 = tpu.matmul %148, %88, %cst_131 {dimension_numbers = #tpu.dot_dimension_numbers<[1], [0], [0], [1], [0, 0, 1, 1], [], []>} : vector<1x64xf32>, vector<64x256xf32>, vector<1x256xf32> -> vector<1x256xf32>
      %154 = arith.addf %152, %153 : vector<1x256xf32>
      %155 = vector.extract_strided_slice %154 {offsets = [0, 0], sizes = [1, 64], strides = [1, 1]} : vector<1x256xf32> to vector<1x64xf32>
      %cst_132 = arith.constant 5.000000e-01 : f32
      %156 = vector.broadcast %cst_132 : f32 to vector<1x64xf32>
      %157 = arith.mulf %156, %155 : vector<1x64xf32>
      %158 = math.tanh %157 : vector<1x64xf32>
      %cst_133 = arith.constant 5.000000e-01 : f32
      %159 = vector.broadcast %cst_133 : f32 to vector<1x64xf32>
      %160 = arith.mulf %159, %158 : vector<1x64xf32>
      %cst_134 = arith.constant 5.000000e-01 : f32
      %161 = vector.broadcast %cst_134 : f32 to vector<1x64xf32>
      %162 = arith.addf %160, %161 : vector<1x64xf32>
      %163 = vector.extract_strided_slice %154 {offsets = [0, 64], sizes = [1, 64], strides = [1, 1]} : vector<1x256xf32> to vector<1x64xf32>
      %cst_135 = arith.constant 5.000000e-01 : f32
      %164 = vector.broadcast %cst_135 : f32 to vector<1x64xf32>
      %165 = arith.mulf %164, %163 : vector<1x64xf32>
      %166 = math.tanh %165 : vector<1x64xf32>
      %cst_136 = arith.constant 5.000000e-01 : f32
      %167 = vector.broadcast %cst_136 : f32 to vector<1x64xf32>
      %168 = arith.mulf %167, %166 : vector<1x64xf32>
      %cst_137 = arith.constant 5.000000e-01 : f32
      %169 = vector.broadcast %cst_137 : f32 to vector<1x64xf32>
      %170 = arith.addf %168, %169 : vector<1x64xf32>
      %171 = vector.extract_strided_slice %154 {offsets = [0, 128], sizes = [1, 64], strides = [1, 1]} : vector<1x256xf32> to vector<1x64xf32>
      %172 = math.tanh %171 : vector<1x64xf32>
      %173 = vector.extract_strided_slice %154 {offsets = [0, 192], sizes = [1, 64], strides = [1, 1]} : vector<1x256xf32> to vector<1x64xf32>
      %cst_138 = arith.constant 5.000000e-01 : f32
      %174 = vector.broadcast %cst_138 : f32 to vector<1x64xf32>
      %175 = arith.mulf %174, %173 : vector<1x64xf32>
      %176 = math.tanh %175 : vector<1x64xf32>
      %cst_139 = arith.constant 5.000000e-01 : f32
      %177 = vector.broadcast %cst_139 : f32 to vector<1x64xf32>
      %178 = arith.mulf %177, %176 : vector<1x64xf32>
      %cst_140 = arith.constant 5.000000e-01 : f32
      %179 = vector.broadcast %cst_140 : f32 to vector<1x64xf32>
      %180 = arith.addf %178, %179 : vector<1x64xf32>
      %181 = arith.mulf %170, %150 : vector<1x64xf32>
      %182 = arith.mulf %162, %172 : vector<1x64xf32>
      %183 = arith.addf %181, %182 : vector<1x64xf32>
      %184 = math.tanh %183 : vector<1x64xf32>
      %185 = arith.mulf %180, %184 : vector<1x64xf32>
      %186 = arith.index_cast %arg42 : i32 to index
      %c0_141 = arith.constant 0 : index
      %187 = vector.load %arg39[%186, %c0_141] : memref<8x64xf32, #tpu.memory_space<vmem>>, vector<1x64xf32>
      tpu.vector_store %arg39[%186, %c0_141], %185 {strides = array<i32>} : memref<8x64xf32, #tpu.memory_space<vmem>>, vector<1x64xf32>,
      scf.yield %185, %183 : vector<1x64xf32>, vector<1x64xf32>
    }
    %c8_i32_87 = arith.constant 8 : i32
    %c0_88 = arith.constant 0 : index
    %c0_89 = arith.constant 0 : index
    %93 = vector.load %arg39[%c0_88, %c0_89] : memref<8x64xf32, #tpu.memory_space<vmem>>, vector<8x64xf32>
    %c0_90 = arith.constant 0 : index
    %c0_91 = arith.constant 0 : index
    %94 = vector.load %arg25[%c0_90, %c0_91] : memref<64x128xf32, #tpu.memory_space<vmem>>, vector<64x128xf32>
    %cst_92 = arith.constant dense<0.000000e+00> : vector<8x128xf32>
    %95 = tpu.matmul %93, %94, %cst_92 {dimension_numbers = #tpu.dot_dimension_numbers<[1], [0], [0], [1], [0, 0, 1, 1], [], []>} : vector<8x64xf32>, vector<64x128xf32>, vector<8x128xf32> -> vector<8x128xf32>
    %c0_93 = arith.constant 0 : index
    %c0_94 = arith.constant 0 : index
    %96 = vector.load %arg26[%c0_93, %c0_94] : memref<1x128xf32, #tpu.memory_space<vmem>>, vector<1x128xf32>
    %97 = vector.broadcast %96 : vector<1x128xf32> to vector<8x128xf32>
    %98 = arith.addf %95, %97 : vector<8x128xf32>
    %c0_95 = arith.constant 0 : index
    %c0_96 = arith.constant 0 : index
    %99 = vector.load %arg41[%c0_95, %c0_96] : memref<8x128xf32, #tpu.memory_space<vmem>>, vector<8x128xf32>
    tpu.vector_store %arg41[%c0_95, %c0_96], %98 {strides = array<i32>} : memref<8x128xf32, #tpu.memory_space<vmem>>, vector<8x128xf32>,
    %100 = tpu.iota {dimensions = array<i32: 1>} : vector<8x8xi32>
    %c0_97 = arith.constant 0 : index
    %c0_98 = arith.constant 0 : index
    %101 = vector.load %arg5[%c0_97, %c0_98] : memref<8x1xi32, #tpu.memory_space<vmem>>, vector<8x1xi32>
    %102 = vector.broadcast %101 : vector<8x1xi32> to vector<8x8xi32>
    %103 = arith.cmpi eq, %100, %102 : vector<8x8xi32>
    %104 = arith.extui %103 : vector<8x8xi1> to vector<8x8xi32>
    %105 = arith.sitofp %104 : vector<8x8xi32> to vector<8x8xf32>
    %c0_99 = arith.constant 0 : index
    %c0_100 = arith.constant 0 : index
    %106 = vector.load %arg6[%c0_99, %c0_100] : memref<8x1xi32, #tpu.memory_space<vmem>>, vector<8x1xi32>
    %107 = vector.broadcast %106 : vector<8x1xi32> to vector<8x8xi32>
    %108 = arith.cmpi eq, %100, %107 : vector<8x8xi32>
    %109 = arith.extui %108 : vector<8x8xi1> to vector<8x8xi32>
    %110 = arith.sitofp %109 : vector<8x8xi32> to vector<8x8xf32>
    %c0_101 = arith.constant 0 : index
    %c0_102 = arith.constant 0 : index
    %111 = vector.load %arg41[%c0_101, %c0_102] : memref<8x128xf32, #tpu.memory_space<vmem>>, vector<8x128xf32>
    %cst_103 = arith.constant dense<0.000000e+00> : vector<8x128xf32>
    %112 = tpu.matmul %105, %111, %cst_103 {dimension_numbers = #tpu.dot_dimension_numbers<[1], [0], [0], [1], [0, 0, 1, 1], [], []>} : vector<8x8xf32>, vector<8x128xf32>, vector<8x128xf32> -> vector<8x128xf32>
    %c0_104 = arith.constant 0 : index
    %c0_105 = arith.constant 0 : index
    %113 = vector.load %arg41[%c0_104, %c0_105] : memref<8x128xf32, #tpu.memory_space<vmem>>, vector<8x128xf32>
    %cst_106 = arith.constant dense<0.000000e+00> : vector<8x128xf32>
    %114 = tpu.matmul %110, %113, %cst_106 {dimension_numbers = #tpu.dot_dimension_numbers<[1], [0], [0], [1], [0, 0, 1, 1], [], []>} : vector<8x8xf32>, vector<8x128xf32>, vector<8x128xf32> -> vector<8x128xf32>
    %c0_107 = arith.constant 0 : index
    %c0_108 = arith.constant 0 : index
    %115 = vector.load %arg27[%c0_107, %c0_108] : memref<128x128xf32, #tpu.memory_space<vmem>>, vector<128x128xf32>
    %cst_109 = arith.constant dense<0.000000e+00> : vector<8x128xf32>
    %116 = tpu.matmul %112, %115, %cst_109 {dimension_numbers = #tpu.dot_dimension_numbers<[1], [0], [0], [1], [0, 0, 1, 1], [], []>} : vector<8x128xf32>, vector<128x128xf32>, vector<8x128xf32> -> vector<8x128xf32>
    %c0_110 = arith.constant 0 : index
    %c0_111 = arith.constant 0 : index
    %117 = vector.load %arg28[%c0_110, %c0_111] : memref<128x128xf32, #tpu.memory_space<vmem>>, vector<128x128xf32>
    %cst_112 = arith.constant dense<0.000000e+00> : vector<8x128xf32>
    %118 = tpu.matmul %114, %117, %cst_112 {dimension_numbers = #tpu.dot_dimension_numbers<[1], [0], [0], [1], [0, 0, 1, 1], [], []>} : vector<8x128xf32>, vector<128x128xf32>, vector<8x128xf32> -> vector<8x128xf32>
    %119 = arith.addf %116, %118 : vector<8x128xf32>
    %c0_113 = arith.constant 0 : index
    %c0_114 = arith.constant 0 : index
    %120 = vector.load %arg29[%c0_113, %c0_114] : memref<1x128xf32, #tpu.memory_space<vmem>>, vector<1x128xf32>
    %121 = vector.broadcast %120 : vector<1x128xf32> to vector<8x128xf32>
    %122 = arith.addf %119, %121 : vector<8x128xf32>
    %c0_115 = arith.constant 0 : index
    %c0_116 = arith.constant 0 : index
    %123 = vector.load %arg4[%c0_115, %c0_116] : memref<8x128xf32, #tpu.memory_space<vmem>>, vector<8x128xf32>
    %124 = arith.mulf %122, %123 : vector<8x128xf32>
    %c0_117 = arith.constant 0 : index
    %c0_118 = arith.constant 0 : index
    %125 = vector.load %arg30[%c0_117, %c0_118] : memref<128x10xf32, #tpu.memory_space<vmem>>, vector<128x10xf32>
    %cst_119 = arith.constant dense<0.000000e+00> : vector<8x10xf32>
    %126 = tpu.matmul %124, %125, %cst_119 {dimension_numbers = #tpu.dot_dimension_numbers<[1], [0], [0], [1], [0, 0, 1, 1], [], []>} : vector<8x128xf32>, vector<128x10xf32>, vector<8x10xf32> -> vector<8x10xf32>
    %c0_120 = arith.constant 0 : index
    %c0_121 = arith.constant 0 : index
    %127 = vector.load %arg31[%c0_120, %c0_121] : memref<1x10xf32, #tpu.memory_space<vmem>>, vector<1x10xf32>
    %128 = vector.broadcast %127 : vector<1x10xf32> to vector<8x10xf32>
    %129 = arith.addf %126, %128 : vector<8x10xf32>
    %cst_122 = arith.constant dense<0.000000e+00> : vector<8x1xf32>
    %130 = tpu.matmul %105, %67, %cst_122 {dimension_numbers = #tpu.dot_dimension_numbers<[1], [0], [0], [1], [0, 0, 1, 1], [], []>} : vector<8x8xf32>, vector<8x1xf32>, vector<8x1xf32> -> vector<8x1xf32>
    %cst_123 = arith.constant dense<0.000000e+00> : vector<8x1xf32>
    %131 = tpu.matmul %110, %67, %cst_123 {dimension_numbers = #tpu.dot_dimension_numbers<[1], [0], [0], [1], [0, 0, 1, 1], [], []>} : vector<8x8xf32>, vector<8x1xf32>, vector<8x1xf32> -> vector<8x1xf32>
    %cst_124 = arith.constant 1.600000e+01 : f32
    %132 = vector.broadcast %cst_124 : f32 to vector<8x1xf32>
    %133 = arith.mulf %130, %132 : vector<8x1xf32>
    %134 = arith.addf %133, %131 : vector<8x1xf32>
    %135 = tpu.iota {dimensions = array<i32: 1>} : vector<8x256xi32>
    %136 = arith.sitofp %135 : vector<8x256xi32> to vector<8x256xf32>
    %137 = vector.broadcast %134 : vector<8x1xf32> to vector<8x256xf32>
    %138 = arith.cmpf oeq, %136, %137 : vector<8x256xf32>
    %139 = arith.extui %138 : vector<8x256xi1> to vector<8x256xi32>
    %140 = arith.sitofp %139 : vector<8x256xi32> to vector<8x256xf32>
    %c0_125 = arith.constant 0 : index
    %c0_126 = arith.constant 0 : index
    %141 = vector.load %arg32[%c0_125, %c0_126] : memref<256x10xf32, #tpu.memory_space<vmem>>, vector<256x10xf32>
    %cst_127 = arith.constant dense<0.000000e+00> : vector<8x10xf32>
    %142 = tpu.matmul %140, %141, %cst_127 {dimension_numbers = #tpu.dot_dimension_numbers<[1], [0], [0], [1], [0, 0, 1, 1], [], []>} : vector<8x256xf32>, vector<256x10xf32>, vector<8x10xf32> -> vector<8x10xf32>
    %143 = arith.addf %129, %142 : vector<8x10xf32>
    %c0_128 = arith.constant 0 : index
    %c0_129 = arith.constant 0 : index
    %144 = vector.load %arg34[%c0_128, %c0_129] : memref<8x10xf32, #tpu.memory_space<vmem>>, vector<8x10xf32>
    tpu.vector_store %arg34[%c0_128, %c0_129], %143 {strides = array<i32>} : memref<8x10xf32, #tpu.memory_space<vmem>>, vector<8x10xf32>,
    return
  }
}

</mosaic_0001>

<bundles_post_ra>
// kernel: _motif_forward_jit.1
= control target key start
LH: loop header
LB: loop body
LE: loop exit
PB: predicated region body
PF: predicated region fallthrough
CT: control target
= control target key end

     0   :  { %s3880_s6 = smov 1   ;;  %s3881_s10 = smov 2   ;;  %s4729_s0 = inlined_call_operand.smem [shape: u32[35], index: -1, kind: input, shape index: {}] }
   0x1   :  { %s3957_s5 = sld [smem:[%s4729_s0]]   ;;  %s3882_s14 = smov 3  }
   0x2   :  { %s3962_s9 = sld [smem:[%s4729_s0 + %s3880_s6]]   ;;  %s3883_s18 = smov 4  }
   0x3   :  { %s3967_s13 = sld [smem:[%s4729_s0 + %s3881_s10]]   ;;  %s3884_s22 = smov 5  }
   0x4   :  { %s3972_s17 = sld [smem:[%s4729_s0 + %s3882_s14]]   ;;  %s3885_s26 = smov 6  }
   0x5   :  { %s3977_s21 = sld [smem:[%s4729_s0 + %s3883_s18]]   ;;  %s3886_s30 = smov 7  }
   0x6   :  { %s3982_s25 = sld [smem:[%s4729_s0 + %s3884_s22]]   ;;  %s3887_s4 = smov 8  }
   0x7   :  { %s3987_s29 = sld [smem:[%s4729_s0 + %s3885_s26]]   ;;  %s3888_s10 = smov 9  }
   0x8   :  { %4741 = sst [smem:[#allocation53_spill]] %s3962_s9  ;;  %s3889_s15 = smov 10  }
   0x9   :  { %4742 = sst [smem:[#allocation54_spill]] %s3967_s13  ;;  %s3890_s20 = smov 11  }
   0xa   :  { %4743 = sst [smem:[#allocation55_spill]] %s3972_s17  ;;  %s3891_s26 = smov 12  }
   0xb   :  { %4744 = sst [smem:[#allocation56_spill]] %s3977_s21  ;;  %s3892_s1 = smov 13  }
   0xc   :  { %4745 = sst [smem:[#allocation57_spill]] %s3982_s25  ;;  %s3893_s7 = smov 14  }
   0xd   :  { %4746 = sst [smem:[#allocation58_spill]] %s3987_s29  ;;  %s3895_s22 = smov 16  }
   0xe   :  { %s3992_s3 = sld [smem:[%s4729_s0 + %s3886_s30]]   ;;  %s3896_s28 = smov 17  }
   0xf   :  { %s3997_s8 = sld [smem:[%s4729_s0 + %s3887_s4]]  }
  0x10   :  { %s4002_s14 = sld [smem:[%s4729_s0 + %s3888_s10]]  }
  0x11   :  { %s4007_s19 = sld [smem:[%s4729_s0 + %s3889_s15]]   ;;  %s3894_s15 = smov 15  }
  0x12   :  { %s4012_s24 = sld [smem:[%s4729_s0 + %s3890_s20]]  }
  0x13   :  { %s4017_s30 = sld [smem:[%s4729_s0 + %s3891_s26]]  }
  0x14   :  { %s4022_s6 = sld [smem:[%s4729_s0 + %s3892_s1]]  }
  0x15   :  { %s4027_s12 = sld [smem:[%s4729_s0 + %s3893_s7]]   ;;  %s3897_s7 = smov 18  }
  0x16   :  { %s4032_s20 = sld [smem:[%s4729_s0 + %s3894_s15]]   ;;  %s3898_s15 = smov 19  }
  0x17   :  { %s4037_s27 = sld [smem:[%s4729_s0 + %s3895_s22]]   ;;  %s3899_s22 = smov 20  }
  0x18   :  { %s4042_s4 = sld [smem:[%s4729_s0 + %s3896_s28]]   ;;  %s3900_s28 = smov 21  }
  0x19   :  { %4747 = sst [smem:[#allocation59_spill]] %s4017_s30 }
  0x1a   :  { %s4047_s21 = sld [smem:[%s4729_s0 + %s3897_s7]]   ;;  %s3901_s7 = smov 22  }
  0x1b   :  { %4748 = sst [smem:[#allocation60_spill]] %s4027_s12 }
  0x1c   :  { %4749 = sst [smem:[#allocation61_spill]] %s4032_s20 }
  0x1d   :  { %s4052_s29 = sld [smem:[%s4729_s0 + %s3898_s15]]   ;;  %s3902_s15 = smov 23  }
  0x1e   :  { %4750 = sst [smem:[#allocation62_spill]] %s4042_s4 }
  0x1f   :  { %s4057_s25 = sld [smem:[%s4729_s0 + %s3899_s22]]   ;;  %s3903_s22 = smov 24  }
  0x20   :  { %s4062_s4 = sld [smem:[%s4729_s0 + %s3900_s28]]   ;;  %s3904_s28 = smov 25  }
  0x21   :  { %s4067_s20 = sld [smem:[%s4729_s0 + %s3901_s7]]   ;;  %s3905_s7 = smov 26  }
  0x22   :  { %s4072_s9 = sld [smem:[%s4729_s0 + %s3902_s15]]   ;;  %s3906_s15 = smov 27  }
  0x23   :  { %s4077_s30 = sld [smem:[%s4729_s0 + %s3903_s22]]   ;;  %s3907_s22 = smov 28  }
  0x24   :  { %s4092_s12 = sld [smem:[%s4729_s0 + %s3906_s15]]   ;;  %s3910_s15 = smov 31  }
  0x25   :  { %s4097_s17 = sld [smem:[%s4729_s0 + %s3907_s22]]   ;;  %s3911_s22 = smov 32  }
  0x26   :  { %4751 = sst [smem:[#allocation63_spill]] %s4062_s4 }
  0x27   :  { %4752 = sst [smem:[#allocation64_spill]] %s4067_s20 }
  0x28   :  { %4753 = sst [smem:[#allocation65_spill]] %s4072_s9 }
  0x29   :  { %s4082_s4 = sld [smem:[%s4729_s0 + %s3904_s28]]   ;;  %s3908_s28 = smov 29  }
  0x2a   :  { %s4087_s20 = sld [smem:[%s4729_s0 + %s3905_s7]]   ;;  %s3909_s7 = smov 30  }
  0x2b   :  { %4755 = sst [smem:[#allocation67_spill]] %s4092_s12 }
  0x2c   :  { %4756 = sst [smem:[#allocation68_spill]] %s4097_s17 }
  0x2d   :  { %s4102_s13 = sld [smem:[%s4729_s0 + %s3908_s28]]   ;;  %s3912_s28 = smov 33  }
  0x2e   :  { %s4112_s12 = sld [smem:[%s4729_s0 + %s3910_s15]]  }
  0x2f   :  { %4754 = sst [smem:[#allocation66_spill]] %s4082_s4 }
  0x30   :  { %s4107_s4 = sld [smem:[%s4729_s0 + %s3909_s7]]   ;;  %s3913_s7 = smov 34  }
  0x31   :  { %s4117_s17 = sld [smem:[%s4729_s0 + %s3911_s22]]  }
  0x32   :  { %s4122_s9 = sld [smem:[%s4729_s0 + %s3912_s28]]  }
  0x36   :  { %4757 = sst [smem:[#allocation69_spill]] %s4107_s4 }
  0x37   :  { %s4127_s4 = sld [smem:[%s4729_s0 + %s3913_s7]]  }
  0x38   :  { %75 = vsyncpa [#allocation12], 0 }
  0x39   :  { %76 = vsyncpa [#allocation10], 0 }
  0x3a   :  { %77 = vsyncpa [#allocation15], 0 }
  0x3b   :  { %78 = vsyncpa [#allocation18], 0 }
  0x3c   :  { %79 = vsyncpa [#allocation21], 0 }
  0x3d   :  { %80 = vsyncpa [#allocation24], 0 }
  0x3e   :  { %81 = vsyncpa [#allocation27], 0 }
  0x3f   :  { %82 = vsyncpa [#allocation30], 0 }
  0x40   :  { %83 = vsyncpa [#allocation33], 0 }
  0x41   :  { %84 = vsyncpa [#allocation36], 0 }
  0x42   :  { %85 = vsyncpa [#allocation11], 0 }
  0x43   :  { %86 = vsyncpa [#allocation40], 0  ;;  %s3914_s15 = smov [#allocation14]   ;;  %s3915_s18 = smov [#allocation17]  }
  0x44   :  { %s127_s16 = sshll.u32 %s3914_s15, 4  ;;  %s149_s0 = sshll.u32 %s3915_s18, 4  ;;  %s128_s16 = int_to_ptr.vmem [resolvable:$true] %s127_s16  ;;  %s150_s0 = int_to_ptr.vmem [resolvable:$true] %s149_s0 }
  0x45   :  { %s3378_s22 = scalar_lea.hbm %s3997_s8, 16 }
  0x46   :  { %p3379_p0 = scmp.ne.s32.totalorder %s3997_s8, %s3378_s22  ;;  %p3382_p1 = scmp.lt.u32.totalorder %s3378_s22, %s3997_s8 }
  0x48   :  { %p3384_p2 = pnand %p3382_p1, %p3379_p0 }
  0x4a   :  { %3387 = shalt.err (!%p3384_p2)
}
  0x4b   :  { %s3388_s23 = scalar_lea.vmem %s128_s16, 16  ;;  %s3392_s26 = scalar_lea.vmem %s128_s16, 32 }
  0x4c   :  { %p3389_p3 = scmp.ne.s32.totalorder %s128_s16, %s3388_s23  ;;  %p3393_p4 = scmp.lt.s32.totalorder %s128_s16, %s128_s16 }
  0x4d   :  { %p3394_p5 = scmp.lt.s32.totalorder %s3392_s26, %s3388_s23 }
  0x4f   :  { %p3395_p6 = por %p3394_p5, %p3393_p4 }
  0x51   :  { %p3396_p7 = pnand %p3395_p6, %p3389_p3 }
  0x53   :  { %3399 = shalt.err (!%p3396_p7)
}
  0x54   :  { %130 = dma.hbm_to_vmem [thread:$0]  %s3997_s8, 16, %s128_s16, [#allocation15]  }
  0x55   :  { %s3400_s28 = scalar_lea.hbm %s4007_s19, 16 }
  0x56   :  { %p3401_p8 = scmp.ne.s32.totalorder %s4007_s19, %s3400_s28  ;;  %p3404_p9 = scmp.lt.u32.totalorder %s3400_s28, %s4007_s19 }
  0x58   :  { %p3406_p10 = pnand %p3404_p9, %p3401_p8 }
  0x5a   :  { %3409 = shalt.err (!%p3406_p10)
}
  0x5b   :  { %s3410_s1 = scalar_lea.vmem %s150_s0, 16  ;;  %s3414_s2 = scalar_lea.vmem %s150_s0, 32 }
  0x5c   :  { %p3411_p11 = scmp.ne.s32.totalorder %s150_s0, %s3410_s1  ;;  %p3415_p12 = scmp.lt.s32.totalorder %s150_s0, %s150_s0 }
  0x5d   :  { %p3416_p13 = scmp.lt.s32.totalorder %s3414_s2, %s3410_s1 }
  0x5f   :  { %p3417_p0 = por %p3416_p13, %p3415_p12 }
  0x61   :  { %p3418_p1 = pnand %p3417_p0, %p3411_p11 }
  0x63   :  { %3421 = shalt.err (!%p3418_p1)
}
  0x64   :  { %152 = dma.hbm_to_vmem [thread:$0]  %s4007_s19, 16, %s150_s0, [#allocation18]  }
  0x65   :  { %s3916_s7 = smov [#allocation20]   ;;  %s3422_s10 = scalar_lea.hbm %s4022_s6, 1024 }
  0x66   :  { %s172_s8 = sshll.u32 %s3916_s7, 4  ;;  %p3423_p2 = scmp.ne.s32.totalorder %s4022_s6, %s3422_s10  ;;  %s173_s8 = int_to_ptr.vmem [resolvable:$true] %s172_s8 }
  0x67   :  { %p3426_p3 = scmp.lt.u32.totalorder %s3422_s10, %s4022_s6 }
  0x69   :  { %p3428_p4 = pnand %p3426_p3, %p3423_p2 }
  0x6b   :  { %3431 = shalt.err (!%p3428_p4)
}
  0x6c   :  { %s3432_s11 = scalar_lea.vmem %s173_s8, 1024  ;;  %p3437_p6 = scmp.lt.s32.totalorder %s173_s8, %s173_s8 }
  0x6d   :  { %p3433_p5 = scmp.ne.s32.totalorder %s173_s8, %s3432_s11  ;;  %p3438_p7 = scmp.lt.s32.totalorder %s3432_s11, %s3432_s11 }
  0x6f   :  { %p3439_p8 = por %p3438_p7, %p3437_p6 }
  0x71   :  { %p3440_p9 = pnand %p3439_p8, %p3433_p5 }
  0x73   :  { %3443 = shalt.err (!%p3440_p9)
}
  0x74   :  { %s3917_s15 = smov 256   ;;  %s3918_s19 = smov 16  }
  0x75   :  { %178 = dma.hbm_to_vmem [thread:$0]  %s4022_s6, 1024, %s173_s8, [#allocation21], %s3917_s15, %s3917_s15, %s3918_s19  }
  0x76   :  { %s3919_s16 = smov [#allocation23]   ;;  %s3920_s0 = smov [#allocation26]  }
  0x77   :  { %s201_s18 = sshll.u32 %s3919_s16, 4  ;;  %s222_s22 = sshll.u32 %s3920_s0, 4  ;;  %s202_s18 = int_to_ptr.vmem [resolvable:$true] %s201_s18  ;;  %s223_s22 = int_to_ptr.vmem [resolvable:$true] %s222_s22 }
  0x78   :  { %s3444_s23 = scalar_lea.hbm %s4047_s21, 16 }
  0x79   :  { %p3445_p10 = scmp.ne.s32.totalorder %s4047_s21, %s3444_s23  ;;  %p3448_p11 = scmp.lt.u32.totalorder %s3444_s23, %s4047_s21 }
  0x7b   :  { %p3450_p12 = pnand %p3448_p11, %p3445_p10 }
  0x7d   :  { %3453 = shalt.err (!%p3450_p12)
}
  0x7e   :  { %s3454_s26 = scalar_lea.vmem %s202_s18, 16  ;;  %s3458_s28 = scalar_lea.vmem %s202_s18, 32 }
  0x7f   :  { %p3455_p13 = scmp.ne.s32.totalorder %s202_s18, %s3454_s26  ;;  %p3459_p0 = scmp.lt.s32.totalorder %s202_s18, %s202_s18 }
  0x80   :  { %p3460_p1 = scmp.lt.s32.totalorder %s3458_s28, %s3454_s26 }
  0x82   :  { %p3461_p2 = por %p3460_p1, %p3459_p0 }
  0x84   :  { %p3462_p3 = pnand %p3461_p2, %p3455_p13 }
  0x86   :  { %3465 = shalt.err (!%p3462_p3)
}
  0x87   :  { %204 = dma.hbm_to_vmem [thread:$0]  %s4047_s21, 16, %s202_s18, [#allocation24]  }
  0x88   :  { %s3466_s6 = scalar_lea.hbm %s4057_s25, 1024 }
  0x89   :  { %p3467_p4 = scmp.ne.s32.totalorder %s4057_s25, %s3466_s6  ;;  %p3470_p5 = scmp.lt.u32.totalorder %s3466_s6, %s4057_s25 }
  0x8b   :  { %p3472_p6 = pnand %p3470_p5, %p3467_p4 }
  0x8d   :  { %3475 = shalt.err (!%p3472_p6)
}
  0x8e   :  { %s3476_s1 = scalar_lea.vmem %s223_s22, 1024  ;;  %p3481_p8 = scmp.lt.s32.totalorder %s223_s22, %s223_s22 }
  0x8f   :  { %p3477_p7 = scmp.ne.s32.totalorder %s223_s22, %s3476_s1  ;;  %p3482_p9 = scmp.lt.s32.totalorder %s3476_s1, %s3476_s1 }
  0x91   :  { %p3483_p10 = por %p3482_p9, %p3481_p8 }
  0x93   :  { %p3484_p11 = pnand %p3483_p10, %p3477_p7 }
  0x95   :  { %3487 = shalt.err (!%p3484_p11)
}
  0x96   :  { %228 = dma.hbm_to_vmem [thread:$0]  %s4057_s25, 1024, %s223_s22, [#allocation27], %s3917_s15, %s3917_s15, %s3918_s19  }
  0x97   :  { %s3921_s21 = smov [#allocation29]   ;;  %s3922_s7 = smov [#allocation32]  }
  0x98   :  { %s251_s2 = sshll.u32 %s3921_s21, 4  ;;  %s273_s8 = sshll.u32 %s3922_s7, 4  ;;  %s252_s2 = int_to_ptr.vmem [resolvable:$true] %s251_s2  ;;  %s274_s8 = int_to_ptr.vmem [resolvable:$true] %s273_s8 }
  0x99   :  { %s3488_s10 = scalar_lea.hbm %s4077_s30, 32 }
  0x9a   :  { %p3489_p12 = scmp.ne.s32.totalorder %s4077_s30, %s3488_s10  ;;  %p3492_p13 = scmp.lt.u32.totalorder %s3488_s10, %s4077_s30 }
  0x9c   :  { %p3494_p0 = pnand %p3492_p13, %p3489_p12 }
  0x9e   :  { %3497 = shalt.err (!%p3494_p0)
}
  0x9f   :  { %s3498_s11 = scalar_lea.vmem %s252_s2, 32  ;;  %p3503_p2 = scmp.lt.s32.totalorder %s252_s2, %s252_s2 }
  0xa0   :  { %p3499_p1 = scmp.ne.s32.totalorder %s252_s2, %s3498_s11  ;;  %p3504_p3 = scmp.lt.s32.totalorder %s3498_s11, %s3498_s11 }
  0xa2   :  { %p3505_p4 = por %p3504_p3, %p3503_p2 }
  0xa4   :  { %p3506_p5 = pnand %p3505_p4, %p3499_p1 }
  0xa6   :  { %3509 = shalt.err (!%p3506_p5)
}
  0xa7   :  { %254 = dma.hbm_to_vmem [thread:$0]  %s4077_s30, 32, %s252_s2, [#allocation30]  }
  0xa8   :  { %s3510_s25 = scalar_lea.hbm %s4087_s20, 16 }
  0xa9   :  { %p3511_p6 = scmp.ne.s32.totalorder %s4087_s20, %s3510_s25  ;;  %p3514_p7 = scmp.lt.u32.totalorder %s3510_s25, %s4087_s20 }
  0xab   :  { %p3516_p8 = pnand %p3514_p7, %p3511_p6 }
  0xad   :  { %3519 = shalt.err (!%p3516_p8)
}
  0xae   :  { %s3520_s16 = scalar_lea.vmem %s274_s8, 16  ;;  %s3524_s18 = scalar_lea.vmem %s274_s8, 32 }
  0xaf   :  { %p3521_p9 = scmp.ne.s32.totalorder %s274_s8, %s3520_s16  ;;  %p3525_p10 = scmp.lt.s32.totalorder %s274_s8, %s274_s8 }
  0xb0   :  { %p3526_p11 = scmp.lt.s32.totalorder %s3524_s18, %s3520_s16 }
  0xb2   :  { %p3527_p12 = por %p3526_p11, %p3525_p10 }
  0xb4   :  { %p3528_p13 = pnand %p3527_p12, %p3521_p9 }
  0xb6   :  { %3531 = shalt.err (!%p3528_p13)
}
  0xb7   :  { %276 = dma.hbm_to_vmem [thread:$0]  %s4087_s20, 16, %s274_s8, [#allocation33]  }
  0xb8   :  { %s3923_s30 = smov [#allocation35]   ;;  %s93_s22 = sshll.u32 %s3957_s5, 4  ;;  %s94_s22 = int_to_ptr.vmem [resolvable:$true] %s93_s22 }
  0xb9   :  { %s297_s0 = sshll.u32 %s3923_s30, 4  ;;  %s3532_s23 = scalar_lea.hbm %s4102_s13, 16  ;;  %s298_s0 = int_to_ptr.vmem [resolvable:$true] %s297_s0 }
  0xba   :  { %p3533_p0 = scmp.ne.s32.totalorder %s4102_s13, %s3532_s23  ;;  %p3536_p1 = scmp.lt.u32.totalorder %s3532_s23, %s4102_s13 }
  0xbc   :  { %p3538_p2 = pnand %p3536_p1, %p3533_p0 }
  0xbe   :  { %3541 = shalt.err (!%p3538_p2)
}
  0xbf   :  { %s3542_s26 = scalar_lea.vmem %s298_s0, 16  ;;  %s3546_s28 = scalar_lea.vmem %s298_s0, 32 }
  0xc0   :  { %p3543_p3 = scmp.ne.s32.totalorder %s298_s0, %s3542_s26  ;;  %p3547_p4 = scmp.lt.s32.totalorder %s298_s0, %s298_s0 }
  0xc1   :  { %p3548_p5 = scmp.lt.s32.totalorder %s3546_s28, %s3542_s26 }
  0xc3   :  { %p3549_p6 = por %p3548_p5, %p3547_p4 }
  0xc5   :  { %p3550_p7 = pnand %p3549_p6, %p3543_p3 }
  0xc7   :  { %3553 = shalt.err (!%p3550_p7)
}
  0xc8   :  { %300 = dma.hbm_to_vmem [thread:$0]  %s4102_s13, 16, %s298_s0, [#allocation36]  }
  0xc9   :  { %s3554_s20 = scalar_lea.vmem %s94_s22, 16  ;;  %p3559_p9 = scmp.lt.s32.totalorder %s94_s22, %s94_s22 }
  0xca   :  { %p3555_p8 = scmp.ne.s32.totalorder %s94_s22, %s3554_s20  ;;  %p3560_p10 = scmp.lt.s32.totalorder %s3554_s20, %s3554_s20 }
  0xcc   :  { %p3561_p11 = por %p3560_p10, %p3559_p9 }
  0xce   :  { %p3562_p12 = pnand %p3561_p11, %p3555_p8 }
  0xd0   :  { %3565 = shalt.err (!%p3562_p12)
}
  0xd1   :  { %s3924_s5 = smov [#allocation9]   ;;  %s3925_s6 = smov [#allocation13]  }
  0xd2   :  { %96 = dma.vmem_to_smem %s94_s22, 16, %s3924_s5, [#allocation12]  }
  0xd3   :  { %s114_s1 = sshll.u32 %s3925_s6, 4  ;;  %s3566_s21 = scalar_lea.hbm %s3992_s3, 256  ;;  %s115_s1 = int_to_ptr.vmem [resolvable:$true] %s114_s1 }
  0xd4   :  { %p3567_p13 = scmp.ne.s32.totalorder %s3992_s3, %s3566_s21  ;;  %p3570_p0 = scmp.lt.u32.totalorder %s3566_s21, %s3992_s3 }
  0xd6   :  { %p3572_p1 = pnand %p3570_p0, %p3567_p13 }
  0xd8   :  { %3575 = shalt.err (!%p3572_p1)
}
  0xd9   :  { %s3576_s13 = scalar_lea.vmem %s115_s1, 256  ;;  %p3581_p3 = scmp.lt.s32.totalorder %s115_s1, %s115_s1 }
  0xda   :  { %p3577_p2 = scmp.ne.s32.totalorder %s115_s1, %s3576_s13  ;;  %p3582_p4 = scmp.lt.s32.totalorder %s3576_s13, %s3576_s13 }
  0xdc   :  { %p3583_p5 = por %p3582_p4, %p3581_p3 }
  0xde   :  { %p3584_p6 = pnand %p3583_p5, %p3577_p2 }
  0xe0   :  { %3587 = shalt.err (!%p3584_p6)
}
  0xe1   :  { %s3926_s2 = smov 128   ;;  %s3927_s7 = smov 8  }
  0xe2   :  { %120 = dma.hbm_to_vmem [thread:$0]  %s3992_s3, 256, %s115_s1, [#allocation10], %s3926_s2, %s3926_s2, %s3927_s7  }
  0xe3   :  { %s3928_s8 = smov [#allocation16]   ;;  %s3929_s11 = smov [#allocation19]  }
  0xe4   :  { %s136_s10 = sshll.u32 %s3928_s8, 4  ;;  %s158_s25 = sshll.u32 %s3929_s11, 4  ;;  %s137_s10 = int_to_ptr.vmem [resolvable:$true] %s136_s10  ;;  %s4175_s25 = int_to_ptr.vmem [resolvable:$true] %s158_s25 }
  0xe5   :  { %s3588_s16 = scalar_lea.hbm %s4002_s14, 512 }
  0xe6   :  { %p3589_p7 = scmp.ne.s32.totalorder %s4002_s14, %s3588_s16  ;;  %p3592_p8 = scmp.lt.u32.totalorder %s3588_s16, %s4002_s14 }
  0xe8   :  { %p3594_p9 = pnand %p3592_p8, %p3589_p7 }
  0xea   :  { %3597 = shalt.err (!%p3594_p9)
}
  0xeb   :  { %s3598_s18 = scalar_lea.vmem %s137_s10, 512  ;;  %p3603_p11 = scmp.lt.s32.totalorder %s137_s10, %s137_s10 }
  0xec   :  { %p3599_p10 = scmp.ne.s32.totalorder %s137_s10, %s3598_s18  ;;  %p3604_p12 = scmp.lt.s32.totalorder %s3598_s18, %s3598_s18 }
  0xee   :  { %p3605_p13 = por %p3604_p12, %p3603_p11 }
  0xf0   :  { %p3606_p0 = pnand %p3605_p13, %p3599_p10 }
  0xf2   :  { %3609 = shalt.err (!%p3606_p0)
}
  0xf3   :  { %142 = dma.hbm_to_vmem [thread:$0]  %s4002_s14, 512, %s137_s10, [#allocation15], %s3926_s2, %s3926_s2, %s3927_s7  }
  0xf4   :  { %s3610_s3 = scalar_lea.hbm %s4012_s24, 256 }
  0xf5   :  { %p3611_p1 = scmp.ne.s32.totalorder %s4012_s24, %s3610_s3  ;;  %p3614_p2 = scmp.lt.u32.totalorder %s3610_s3, %s4012_s24 }
  0xf7   :  { %p3616_p3 = pnand %p3614_p2, %p3611_p1 }
  0xf9   :  { %3619 = shalt.err (!%p3616_p3)
}
  0xfa   :  { %s3620_s30 = scalar_lea.vmem %s4175_s25, 256  ;;  %p3625_p5 = scmp.lt.s32.totalorder %s4175_s25, %s4175_s25 }
  0xfb   :  { %p3621_p4 = scmp.ne.s32.totalorder %s4175_s25, %s3620_s30  ;;  %p3626_p6 = scmp.lt.s32.totalorder %s3620_s30, %s3620_s30 }
  0xfd   :  { %p3627_p7 = por %p3626_p6, %p3625_p5 }
  0xff   :  { %p3628_p8 = pnand %p3627_p7, %p3621_p4 }
 0x101   :  { %3631 = shalt.err (!%p3628_p8)
}
 0x102   :  { %164 = dma.hbm_to_vmem [thread:$0]  %s4012_s24, 256, %s4175_s25, [#allocation18], %s3926_s2, %s3926_s2, %s3927_s7  }
 0x103   :  { %s3930_s14 = smov [#allocation22]   ;;  %s3931_s22 = smov [#allocation25]  }
 0x104   :  { %s189_s0 = sshll.u32 %s3930_s14, 4  ;;  %s210_s23 = sshll.u32 %s3931_s22, 4  ;;  %s190_s0 = int_to_ptr.vmem [resolvable:$true] %s189_s0  ;;  %s4196_s23 = int_to_ptr.vmem [resolvable:$true] %s210_s23 }
 0x105   :  { %s3632_s26 = scalar_lea.hbm %s4037_s27, 32 }
 0x106   :  { %p3633_p9 = scmp.ne.s32.totalorder %s4037_s27, %s3632_s26  ;;  %p3636_p10 = scmp.lt.u32.totalorder %s3632_s26, %s4037_s27 }
 0x108   :  { %p3638_p11 = pnand %p3636_p10, %p3633_p9 }
 0x10a   :  { %3641 = shalt.err (!%p3638_p11)
}
 0x10b   :  { %s3642_s28 = scalar_lea.vmem %s190_s0, 32  ;;  %p3647_p13 = scmp.lt.s32.totalorder %s190_s0, %s190_s0 }
 0x10c   :  { %p3643_p12 = scmp.ne.s32.totalorder %s190_s0, %s3642_s28  ;;  %p3648_p0 = scmp.lt.s32.totalorder %s3642_s28, %s3642_s28 }
 0x10e   :  { %p3649_p1 = por %p3648_p0, %p3647_p13 }
 0x110   :  { %p3650_p2 = pnand %p3649_p1, %p3643_p12 }
 0x112   :  { %3653 = shalt.err (!%p3650_p2)
}
 0x113   :  { %192 = dma.hbm_to_vmem [thread:$0]  %s4037_s27, 32, %s190_s0, [#allocation21]  }
 0x114   :  { %s3654_s24 = scalar_lea.hbm %s4052_s29, 256 }
 0x115   :  { %p3655_p3 = scmp.ne.s32.totalorder %s4052_s29, %s3654_s24  ;;  %p3658_p4 = scmp.lt.u32.totalorder %s3654_s24, %s4052_s29 }
 0x117   :  { %p3660_p5 = pnand %p3658_p4, %p3655_p3 }
 0x119   :  { %3663 = shalt.err (!%p3660_p5)
}
 0x11a   :  { %s3664_s20 = scalar_lea.vmem %s4196_s23, 256  ;;  %p3669_p7 = scmp.lt.s32.totalorder %s4196_s23, %s4196_s23 }
 0x11b   :  { %p3665_p6 = scmp.ne.s32.totalorder %s4196_s23, %s3664_s20  ;;  %p3670_p8 = scmp.lt.s32.totalorder %s3664_s20, %s3664_s20 }
 0x11d   :  { %p3671_p9 = por %p3670_p8, %p3669_p7 }
 0x11f   :  { %p3672_p10 = pnand %p3671_p9, %p3665_p6 }
 0x121   :  { %3675 = shalt.err (!%p3672_p10)
}
 0x122   :  { %s4758_s27 = sld [smem:[#allocation65_spill]]  ;;  %s3932_s5 = smov [#allocation28]  }
 0x123   :  { %216 = dma.hbm_to_vmem [thread:$0]  %s4052_s29, 256, %s4196_s23, [#allocation24], %s3926_s2, %s3926_s2, %s3927_s7  }
 0x124   :  { %s238_s6 = sshll.u32 %s3932_s5, 4  ;;  %s3933_s1 = smov [#allocation31]   ;;  %s239_s6 = int_to_ptr.vmem [resolvable:$true] %s238_s6 }
 0x125   :  { %s260_s21 = sshll.u32 %s3933_s1, 4  ;;  %s4214_s21 = int_to_ptr.vmem [resolvable:$true] %s260_s21 }
 0x128   :  { %s3676_s13 = scalar_lea.hbm %s4758_s27, 2048 }
 0x129   :  { %p3677_p11 = scmp.ne.s32.totalorder %s4758_s27, %s3676_s13  ;;  %p3680_p12 = scmp.lt.u32.totalorder %s3676_s13, %s4758_s27 }
 0x12b   :  { %p3682_p13 = pnand %p3680_p12, %p3677_p11 }
 0x12d   :  { %3685 = shalt.err (!%p3682_p13)
}
 0x12e   :  { %s3686_s8 = scalar_lea.vmem %s239_s6, 2048  ;;  %p3691_p1 = scmp.lt.s32.totalorder %s239_s6, %s239_s6 }
 0x12f   :  { %p3687_p0 = scmp.ne.s32.totalorder %s239_s6, %s3686_s8  ;;  %p3692_p2 = scmp.lt.s32.totalorder %s3686_s8, %s3686_s8 }
 0x131   :  { %p3693_p3 = por %p3692_p2, %p3691_p1 }
 0x133   :  { %p3694_p4 = pnand %p3693_p3, %p3687_p0 }
 0x135   :  { %3697 = shalt.err (!%p3694_p4)
}
 0x136   :  { %s4759_s29 = sld [smem:[#allocation66_spill]] }
 0x137   :  { %244 = dma.hbm_to_vmem [thread:$0]  %s4758_s27, 2048, %s239_s6, [#allocation27], %s3917_s15, %s3917_s15, %s3918_s19  }
 0x13c   :  { %s3698_s10 = scalar_lea.hbm %s4759_s29, 1024 }
 0x13d   :  { %p3699_p5 = scmp.ne.s32.totalorder %s4759_s29, %s3698_s10  ;;  %p3702_p6 = scmp.lt.u32.totalorder %s3698_s10, %s4759_s29 }
 0x13f   :  { %p3704_p7 = pnand %p3702_p6, %p3699_p5 }
 0x141   :  { %3707 = shalt.err (!%p3704_p7)
}
 0x142   :  { %s3708_s11 = scalar_lea.vmem %s4214_s21, 1024  ;;  %p3713_p9 = scmp.lt.s32.totalorder %s4214_s21, %s4214_s21 }
 0x143   :  { %p3709_p8 = scmp.ne.s32.totalorder %s4214_s21, %s3708_s11  ;;  %p3714_p10 = scmp.lt.s32.totalorder %s3708_s11, %s3708_s11 }
 0x145   :  { %p3715_p11 = por %p3714_p10, %p3713_p9 }
 0x147   :  { %p3716_p12 = pnand %p3715_p11, %p3709_p8 }
 0x149   :  { %3719 = shalt.err (!%p3716_p12)
}
 0x14a   :  { %s4760_s15 = sld [smem:[#allocation68_spill]]  ;;  %s3934_s19 = smov [#allocation34]  }
 0x14b   :  { %266 = dma.hbm_to_vmem [thread:$0]  %s4759_s29, 1024, %s4214_s21, [#allocation30], %s3926_s2, %s3926_s2, %s3927_s7  }
 0x14c   :  { %s284_s25 = sshll.u32 %s3934_s19, 4  ;;  %s3935_s16 = smov [#allocation37]   ;;  %s285_s25 = int_to_ptr.vmem [resolvable:$true] %s284_s25 }
 0x14d   :  { %s309_s18 = sshll.u32 %s3935_s16, 4  ;;  %s310_s18 = int_to_ptr.vmem [resolvable:$true] %s309_s18 }
 0x150   :  { %s3720_s3 = scalar_lea.hbm %s4760_s15, 2048 }
 0x151   :  { %p3721_p13 = scmp.ne.s32.totalorder %s4760_s15, %s3720_s3  ;;  %p3724_p0 = scmp.lt.u32.totalorder %s3720_s3, %s4760_s15 }
 0x153   :  { %p3726_p1 = pnand %p3724_p0, %p3721_p13 }
 0x155   :  { %3729 = shalt.err (!%p3726_p1)
}
 0x156   :  { %s3730_s30 = scalar_lea.vmem %s285_s25, 2048  ;;  %p3735_p3 = scmp.lt.s32.totalorder %s285_s25, %s285_s25 }
 0x157   :  { %p3731_p2 = scmp.ne.s32.totalorder %s285_s25, %s3730_s30  ;;  %p3736_p4 = scmp.lt.s32.totalorder %s3730_s30, %s3730_s30 }
 0x159   :  { %p3737_p5 = por %p3736_p4, %p3735_p3 }
 0x15b   :  { %p3738_p6 = pnand %p3737_p5, %p3731_p2 }
 0x15d   :  { %3741 = shalt.err (!%p3738_p6)
}
 0x15e   :  { %290 = dma.hbm_to_vmem [thread:$0]  %s4760_s15, 2048, %s285_s25, [#allocation33], %s3926_s2, %s3926_s2, %s3927_s7  }
 0x15f   :  { %s3742_s14 = scalar_lea.hbm %s4112_s12, 16 }
 0x160   :  { %p3743_p7 = scmp.ne.s32.totalorder %s4112_s12, %s3742_s14  ;;  %p3746_p8 = scmp.lt.u32.totalorder %s3742_s14, %s4112_s12 }
 0x162   :  { %p3748_p9 = pnand %p3746_p8, %p3743_p7 }
 0x164   :  { %3751 = shalt.err (!%p3748_p9)
}
 0x165   :  { %s3752_s0 = scalar_lea.vmem %s310_s18, 16  ;;  %s3756_s22 = scalar_lea.vmem %s310_s18, 32 }
 0x166   :  { %p3753_p10 = scmp.ne.s32.totalorder %s310_s18, %s3752_s0  ;;  %p3757_p11 = scmp.lt.s32.totalorder %s310_s18, %s310_s18 }
 0x167   :  { %p3758_p12 = scmp.lt.s32.totalorder %s3756_s22, %s3752_s0 }
 0x169   :  { %p3759_p13 = por %p3758_p12, %p3757_p11 }
 0x16b   :  { %p3760_p0 = pnand %p3759_p13, %p3753_p10 }
 0x16d   :  { %3763 = shalt.err (!%p3760_p0)
}
 0x16e   :  { %312 = dma.hbm_to_vmem [thread:$0]  %s4112_s12, 16, %s310_s18, [#allocation36]  }
 0x16f   :  { %3832 = dma.done.wait [#allocation12], 16  }
 0x170   :  { %3833 = vsyncadd [#allocation12], 4294967280 }
 0x171   :  { %3834 = dma.done.wait [#allocation10], 256  }
 0x172   :  { %3835 = vsyncadd [#allocation10], 4294967040 }
 0x173   :  { %3836 = dma.done.wait [#allocation15], 528  }
 0x174   :  { %3837 = vsyncadd [#allocation15], 4294966768 }
 0x175   :  { %3838 = dma.done.wait [#allocation18], 272  }
 0x176   :  { %3839 = vsyncadd [#allocation18], 4294967024 }
 0x177   :  { %3840 = dma.done.wait [#allocation21], 1056  }
 0x178   :  { %3841 = vsyncadd [#allocation21], 4294966240 }
 0x179   :  { %3842 = dma.done.wait [#allocation24], 272  }
 0x17a   :  { %3843 = vsyncadd [#allocation24], 4294967024 }
 0x17b   :  { %3844 = dma.done.wait [#allocation27], 3072  }
 0x17c   :  { %3845 = vsyncadd [#allocation27], 4294964224 }
 0x17d   :  { %3846 = dma.done.wait [#allocation30], 1056  }
 0x17e   :  { %3847 = vsyncadd [#allocation30], 4294966240 }
 0x17f   :  { %3848 = dma.done.wait [#allocation33], 2064  }
 0x180   :  { %3849 = vsyncadd [#allocation33], 4294965232 }
 0x181   :  { %3850 = dma.done.wait [#allocation36], 32  }
 0x182   :  { %3851 = vsyncadd [#allocation36], 4294967264 }
 0x183   :  { %369 = sfence }
 0x184   :  { %s4761_s12 = sld [smem:[#allocation54_spill]]  ;;  %vm546_vm0 = vcmask 130048   ;;  %s4762_s2 = sld [smem:[#allocation55_spill]]  ;;  %v371_v1 = vld [vmem:[#allocation13] sm:$0xff]  ;;  %v372_v2 = vld [vmem:[#allocation13 + $0x8] sm:$0x1] }
 0x185   :  { %v3936_v4 = vmov 0.0|0.0   ;;  %vm384_vm1 = vcmask 1040384   ;;  %v2960_v5 = vpack.c.bf16 %v372_v2, %v371_v1  ;;  %vm3937_vm2 = vmmov 1   ;;  %s4763_s7 = sld [smem:[#allocation60_spill]]  ;;  %v558_v13 = vld [vmem:[#allocation19] sm:$0xff]  ;;  %v559_v14 = vld [vmem:[#allocation19 + $0x8] sm:$0xff] }
 0x186   :  { %2959 = vmatprep.subr.bf16.mxu0 %v3936_v4  ;;  %2963 = vmatprep.subr.bf16.mxu1 %v3936_v4  ;;  %vm2961_vm3 = vmpackc.low %vm384_vm1, %vm3937_vm2  ;;  %vm3938_vm4 = vmmov 0   ;;  %v3939_v6 = vmov 0.0   ;;  %vm380_vm5 = vcmask 72704   ;;  %v2970_v15 = vpack.c.bf16 %v559_v14, %v558_v13  ;;  %v458_v16 = vld [vmem:[#allocation16] sm:$0xff]  ;;  %v459_v17 = vld [vmem:[#allocation16 + $0x8] sm:$0xff]  ;;  %s4764_s23 = sld [smem:[#allocation59_spill]] }
 0x187   :  { %2962 = vmatpush3.bf16.msk.msra.mxu0 %vm2961_vm3, %v2960_v5  ;;  %2768 = vmatprep.mubr.msk.f32.mxu0 %vm3938_vm4, %v3939_v6  ;;  %v2964_v18 = vpack.c.bf16 %v459_v17, %v458_v16  ;;  %v460_v19 = vld [vmem:[#allocation16 + $0x10] sm:$0xff]  ;;  %v461_v20 = vld [vmem:[#allocation16 + $0x18] sm:$0xff]  ;;  %vm469_vm6 = vcmask 261120   ;;  %v654_v50 = vld [vmem:[#allocation20 + $0x10] sm:$0xff]  ;;  %s4765_s26 = sld [smem:[#allocation53_spill]]  ;;  %vm734_vm7 = vcmask 523264  }
 0x188   :  { %2969 = vmatprep.subr.bf16.mxu0 %v3936_v4  ;;  %2779 = vmatprep.mubr.msk.f32.mxu1 %vm3938_vm4, %v3939_v6  ;;  %v2967_v23 = vpack.c.bf16 %v461_v20, %v460_v19  ;;  %v2601_v27 = vld [vmem:[#allocation14] ss:$0 sm:$0xff]  ;;  %v655_v45 = vld [vmem:[#allocation20 + $0x18] sm:$0xff]  ;;  %v652_v49 = vld [vmem:[#allocation20] sm:$0xff]  ;;  %s4766_s28 = sld [smem:[#allocation61_spill]]  ;;  %s4381_s24 = smov 0  }
 0x189   :  { %2965 = vmatpush3.bf16.msra.mxu1 %v2964_v18  ;;  %v653_v44 = vld [vmem:[#allocation20 + $0x8] sm:$0xff]  ;;  %v2974_v52 = vpack.c.bf16 %v654_v50, %v652_v49  ;;  %v659_v57 = vld [vmem:[#allocation20 + $0x38] sm:$0xff]  ;;  %v656_v61 = vld [vmem:[#allocation20 + $0x20] sm:$0xff] }
 0x18a   :  { %v545_v0 = vld [vmem:[%s4761_s12] sm:$0xff]  ;;  %2966 = vmatprep.subr.bf16.mxu1 %v3936_v4  ;;  %v2972_v47 = vpack.c.bf16 %v655_v45, %v653_v44 }
 0x18b   :  { %v547_v3 = vsel %vm546_vm0, %v545_v0, -inf  ;;  %v370_v7 = vld [vmem:[%s4762_s2] sm:$0xff]  ;;  %v811_v21 = vld [vmem:[%s4763_s7 + $0x8] sm:$0xff]  ;;  %v813_v22 = vld [vmem:[%s4763_s7 + $0x18] sm:$0xff] }
 0x18c   :  { %548 = vmax.xlane.f32.xlu0 %v547_v3  ;;  %2769 = vmatmul.mubr.msk.f32.vlgmr.msra.gmra.mrb[0].mxu0 %vm380_vm5, %v370_v7  ;;  %v2996_v24 = vpack.c.bf16 %v813_v22, %v811_v21  ;;  %v810_v25 = vld [vmem:[%s4763_s7] sm:$0xff]  ;;  %v812_v26 = vld [vmem:[%s4763_s7 + $0x10] sm:$0xff]  ;;  %v815_v28 = vld [vmem:[%s4763_s7 + $0x28] sm:$0xff] }
 0x18d   :  { %2786 = vmatprep.mubr.msk.f32.mxu0 %vm3938_vm4, %v3939_v6  ;;  %2971 = vmatpush3.bf16.msra.mxu0 %v2970_v15  ;;  %v817_v29 = vld [vmem:[%s4763_s7 + $0x38] sm:$0xff]  ;;  %v2998_v31 = vpack.c.bf16 %v812_v26, %v810_v25  ;;  %v814_v35 = vld [vmem:[%s4763_s7 + $0x20] sm:$0xff]  ;;  %v816_v36 = vld [vmem:[%s4763_s7 + $0x30] sm:$0xff] }
 0x18e   :  { %2968 = vmatpush3.bf16.msra.mxu1 %v2967_v23  ;;  %v3000_v34 = vpack.c.bf16 %v817_v29, %v815_v28  ;;  %v819_v37 = vld [vmem:[%s4763_s7 + $0x48] sm:$0xff]  ;;  %v821_v38 = vld [vmem:[%s4763_s7 + $0x58] sm:$0xff]  ;;  %v3002_v39 = vpack.c.bf16 %v816_v36, %v814_v35  ;;  %v818_v46 = vld [vmem:[%s4763_s7 + $0x40] sm:$0xff]  ;;  %2973 = vmatprep.subr.bf16.mxu0 %v2972_v47 }
 0x18f   :  { %2997 = vmatprep.subr.bf16.mxu1 %v2996_v24  ;;  %v3004_v40 = vpack.c.bf16 %v821_v38, %v819_v37  ;;  %v820_v48 = vld [vmem:[%s4763_s7 + $0x50] sm:$0xff]  ;;  %v823_v53 = vld [vmem:[%s4763_s7 + $0x68] sm:$0xff]  ;;  %v825_v54 = vld [vmem:[%s4763_s7 + $0x78] sm:$0xff] }
 0x190   :  { %v3006_v51 = vpack.c.bf16 %v820_v48, %v818_v46  ;;  %v3008_v55 = vpack.c.bf16 %v825_v54, %v823_v53  ;;  %v657_v56 = vld [vmem:[#allocation20 + $0x28] sm:$0xff]  ;;  %v824_v60 = vld [vmem:[%s4763_s7 + $0x70] sm:$0xff]  ;;  %v658_v62 = vld [vmem:[#allocation20 + $0x30] sm:$0xff] }
 0x191   :  { %v822_v58 = vld [vmem:[%s4763_s7 + $0x60] sm:$0xff]  ;;  %v2976_v59 = vpack.c.bf16 %v659_v57, %v657_v56  ;;  %v827_v1 = vld [vmem:[%s4763_s7 + $0x88] sm:$0xff]  ;;  %v829_v2 = vld [vmem:[%s4763_s7 + $0x98] sm:$0xff] }
 0x192   :  { %v3010_v63 = vpack.c.bf16 %v824_v60, %v822_v58  ;;  %v636_v3 = vld [vmem:[%s4764_s23 + $0x8] sm:$0xff]  ;;  %v3012_v5 = vpack.c.bf16 %v829_v2, %v827_v1  ;;  %v638_v7 = vld [vmem:[%s4764_s23 + $0x18] sm:$0xff]  ;;  %v830_v15 = vld [vmem:[%s4763_s7 + $0xa0] sm:$0xff] }
 0x193   :  { %v833_v13 = vld [vmem:[%s4763_s7 + $0xb8] sm:$0xff]  ;;  %v832_v16 = vld [vmem:[%s4763_s7 + $0xb0] sm:$0xff]  ;;  %v835_v18 = vld [vmem:[%s4763_s7 + $0xc8] sm:$0xff] }
 0x194   :  { %v3018_v17 = vpack.c.bf16 %v832_v16, %v830_v15  ;;  %v837_v19 = vld [vmem:[%s4763_s7 + $0xd8] sm:$0xff]  ;;  %v834_v21 = vld [vmem:[%s4763_s7 + $0xc0] sm:$0xff]  ;;  %v836_v22 = vld [vmem:[%s4763_s7 + $0xd0] sm:$0xff]  ;;  %v917_v16 = vlaneseq }
 0x195   :  { %v3020_v20 = vpack.c.bf16 %v837_v19, %v835_v18  ;;  %v3022_v23 = vpack.c.bf16 %v836_v22, %v834_v21  ;;  %v839_v24 = vld [vmem:[%s4763_s7 + $0xe8] sm:$0xff]  ;;  %v841_v25 = vld [vmem:[%s4763_s7 + $0xf8] sm:$0xff]  ;;  %v840_v28 = vld [vmem:[%s4763_s7 + $0xf0] sm:$0xff] }
 0x196   :  { %v3024_v26 = vpack.c.bf16 %v841_v25, %v839_v24  ;;  %v635_v37 = vld [vmem:[%s4764_s23] sm:$0xff]  ;;  %v637_v38 = vld [vmem:[%s4764_s23 + $0x10] sm:$0xff]  ;;  %v644_v46 = vld [vmem:[%s4764_s23 + $0x48] sm:$0xff] }
 0x197   :  { %v641_v44 = vld [vmem:[%s4764_s23 + $0x30] sm:$0xff]  ;;  %v646_v47 = vld [vmem:[%s4764_s23 + $0x58] sm:$0xff]  ;;  %v643_v50 = vld [vmem:[%s4764_s23 + $0x40] sm:$0xff] }
 0x198   :  { %v2988_v49 = vpack.c.bf16 %v646_v47, %v644_v46  ;;  %v650_v53 = vld [vmem:[%s4764_s23 + $0x78] sm:$0xff]  ;;  %v647_v56 = vld [vmem:[%s4764_s23 + $0x60] sm:$0xff]  ;;  %v649_v57 = vld [vmem:[%s4764_s23 + $0x70] sm:$0xff] }
 0x199   :  { %v2994_v58 = vpack.c.bf16 %v649_v57, %v647_v56  ;;  %v4321_v60 = vld [vmem:[%s4766_s28] sm:$0xff]  ;;  %v4336_v1 = vld [vmem:[%s4766_s28 + $0x28] sm:$0xff]  ;;  %v4339_v2 = vld [vmem:[%s4766_s28 + $0x30] sm:$0xff] }
 0x19a   :  { %v915_v19 = vld [vmem:[#allocation22] sm:$0x3] }
 0x219   :  { %v549_v8 = vpop.xlane.xlu0 %548 }
 0x21a   :  { %v550_v9 = vsub.f32 %v545_v0, %v549_v8  ;;  %v2978_v0 = vpack.c.bf16 %v658_v62, %v656_v61  ;;  %v826_v8 = vld [vmem:[%s4763_s7 + $0x80] sm:$0xff]  ;;  %v4324_v61 = vld [vmem:[%s4766_s28 + $0x8] sm:$0xff]  ;;  %v4327_v62 = vld [vmem:[%s4766_s28 + $0x10] sm:$0xff] }
 0x21c   :  { %v551_v10 = vmul.f32 1.442695, %v550_v9  ;;  %v828_v9 = vld [vmem:[%s4763_s7 + $0x90] sm:$0xff] }
 0x21e   :  { %3356 = vpow2.f32 %v551_v10  ;;  %v2980_v10 = vpack.c.bf16 %v638_v7, %v636_v3  ;;  %v4342_v3 = vld [vmem:[%s4766_s28 + $0x38] sm:$0xff]  ;;  %v4348_v7 = vld [vmem:[%s4766_s28 + $0x48] sm:$0xff] }
 0x228   :  { %v3357_v11 = vpop.eup %3356 }
 0x229   :  { %v553_v12 = vsel %vm546_vm0, %v3357_v11, 0.0 }
 0x22a   :  { %554 = vadd.xlane.f32.xlu0 %v553_v12  ;;  %v831_v12 = vld [vmem:[%s4763_s7 + $0xa8] sm:$0xff] }
 0x22b   :  { %v3016_v14 = vpack.c.bf16 %v833_v13, %v831_v12  ;;  %v4363_v12 = vld [vmem:[%s4766_s28 + $0x70] sm:$0xff]  ;;  %v4366_v13 = vld [vmem:[%s4766_s28 + $0x78] sm:$0xff] }
 0x25f   :  { %v454_v30 = vpop.f32.mrb[0].mxu0 }
 0x260   :  { %v455_v32 = vadd.f32 %v2601_v27, %v454_v30  ;;  %v2770_v33 = vpop.f32.mrb[1].mxu0  ;;  %v838_v27 = vld [vmem:[%s4763_s7 + $0xe0] sm:$0xff] }
 0x261   :  { %v3026_v29 = vpack.c.bf16 %v840_v28, %v838_v27  ;;  %v2604_v30 = vld [vmem:[#allocation17] ss:$0 sm:$0xff] }
 0x262   :  { %2780 = vmatmul.mubr.msk.f32.vlgmr.msra.gmra.mrb[0].mxu1 %vm469_vm6, %v455_v32 }
 0x263   :  { %2999 = vmatpush1.bf16.msra.mxu1 %v2998_v31  ;;  %906 = vmatprep.mubr.f32.mxu1 %v3939_v6 }
 0x264   :  { %3001 = vmatprep.subr.bf16.mxu1 %v3000_v34 }
 0x267   :  { %3003 = vmatpush1.bf16.msra.mxu1 %v3002_v39  ;;  %v640_v39 = vld [vmem:[%s4764_s23 + $0x28] sm:$0xff] }
 0x268   :  { %3005 = vmatprep.subr.bf16.mxu1 %v3004_v40  ;;  %v642_v40 = vld [vmem:[%s4764_s23 + $0x38] sm:$0xff] }
 0x26b   :  { %3007 = vmatpush1.bf16.msra.mxu1 %v3006_v51  ;;  %v645_v51 = vld [vmem:[%s4764_s23 + $0x50] sm:$0xff] }
 0x26c   :  { %3009 = vmatprep.subr.bf16.mxu1 %v3008_v55  ;;  %v2990_v54 = vpack.c.bf16 %v645_v51, %v643_v50 }
 0x26f   :  { %3011 = vmatpush1.bf16.msra.mxu1 %v3010_v63  ;;  %v4330_v63 = vld [vmem:[%s4766_s28 + $0x18] sm:$0xff] }
 0x270   :  { %3013 = vmatprep.subr.bf16.mxu1 %v3012_v5  ;;  %v4345_v5 = vld [vmem:[%s4766_s28 + $0x40] sm:$0xff] }
 0x2b7   :  { %v555_v41 = vpop.xlane.xlu0 %554 }
 0x2b8   :  { %3358 = vrcp.f32 %v555_v41  ;;  %v2982_v41 = vpack.c.bf16 %v637_v38, %v635_v37 }
 0x2c2   :  { %v3359_v42 = vpop.eup %3358 }
 0x2c3   :  { %v557_v43 = vmul.f32 %v3359_v42, %v3357_v11  ;;  %v3014_v11 = vpack.c.bf16 %v828_v9, %v826_v8  ;;  %v2984_v42 = vpack.c.bf16 %v642_v40, %v640_v39  ;;  %v4351_v8 = vld [vmem:[%s4766_s28 + $0x50] sm:$0xff]  ;;  %v4354_v9 = vld [vmem:[%s4766_s28 + $0x58] sm:$0xff] }
 0x2c5   :  { %2787 = vmatmul.mubr.msk.f32.vlgmr.msra.gmra.mrb[2].mxu0 %vm546_vm0, %v557_v43  ;;  %3015 = vmatpush1.bf16.msra.mxu1 %v3014_v11  ;;  %v639_v43 = vld [vmem:[%s4764_s23 + $0x20] sm:$0xff]  ;;  %v4360_v11 = vld [vmem:[%s4766_s28 + $0x68] sm:$0xff] }
 0x2c6   :  { %727 = vmatprep.mubr.f32.mxu0 %v3939_v6  ;;  %2975 = vmatpush1.bf16.msra.mxu0 %v2974_v52  ;;  %v2986_v48 = vpack.c.bf16 %v641_v44, %v639_v43  ;;  %v648_v52 = vld [vmem:[%s4764_s23 + $0x68] sm:$0xff] }
 0x2c7   :  { %2977 = vmatprep.subr.bf16.mxu0 %v2976_v59  ;;  %3017 = vmatprep.subr.bf16.mxu1 %v3016_v14  ;;  %v2992_v55 = vpack.c.bf16 %v650_v53, %v648_v52  ;;  %v4316_v59 = vld [vmem:[%s4765_s26] sm:$0xff] }
 0x2c9   :  { %3019 = vmatpush1.bf16.msra.mxu1 %v3018_v17  ;;  %v4369_v17 = vshrl.u32 %v917_v16, 7 }
 0x2ca   :  { %2979 = vmatpush1.bf16.msra.mxu0 %v2978_v0  ;;  %3021 = vmatprep.subr.bf16.mxu1 %v3020_v20  ;;  %v4333_v0 = vld [vmem:[%s4766_s28 + $0x20] sm:$0xff] }
 0x2cb   :  { %2981 = vmatprep.subr.bf16.mxu0 %v2980_v10  ;;  %v4357_v10 = vld [vmem:[%s4766_s28 + $0x60] sm:$0xff]  ;;  %v919_v18 = vsub.s32 0, %v4369_v17  ;;  %v923_v20 = vsub.s32 1, %v4369_v17 }
 0x2cd   :  { %3023 = vmatpush1.bf16.msra.mxu1 %v3022_v23  ;;  %v920_v21 = vrot.slane %v915_v19, %v919_v18  ;;  %v924_v23 = vrot.slane %v915_v19, %v923_v20 }
 0x2ce   :  { %3025 = vmatprep.subr.bf16.mxu1 %v3024_v26 }
 0x2d1   :  { %3027 = vmatpush1.bf16.msra.mxu1 %v3026_v29  ;;  %v4377_v29 = vmov 0.0  }
 0x335   :  { %v539_v31 = vpop.f32.mrb[0].mxu1 }
 0x336   :  { %v540_v32 = vadd.f32 %v2604_v30, %v539_v31  ;;  %v2781_v33 = vpop.f32.mrb[1].mxu1  ;;  %v4379_v30 = vmov 0.0  }
 0x338   :  { %v543_v34 = vmax.f32 %v540_v32, 0.0 }
 0x33a   :  { %907 = vmatmul.mubr.f32.vlgmr.msra.gmra.mrb[2].mxu1 %v543_v34 }
 0x398   :  { %v629_v35 = vpop.f32.mrb[2].mxu0 }
 0x399   :  { %633 = vst.msk [vmem:[#allocation3] sm:$0xff] %vm469_vm6, %v629_v35  ;;  %v2788_v36 = vpop.f32.mrb[3].mxu0 }
 0x3a0   :  { %v651_v45 = vld [vmem:[#allocation3] sm:$0xff] }
 0x3a1   :  { %2607 = vmatmul.mubr.msk.f32.vlgmr.msra.gmra.mrb[4].mxu0 %vm469_vm6, %v651_v45 }
 0x3a2   :  { %2983 = vmatpush1.bf16.msra.mxu0 %v2982_v41  ;;  %802 = vmatprep.mubr.f32.mxu0 %v3939_v6 }
 0x3a3   :  { %2985 = vmatprep.subr.bf16.mxu0 %v2984_v42 }
 0x3a6   :  { %2987 = vmatpush1.bf16.msra.mxu0 %v2986_v48 }
 0x3a7   :  { %2989 = vmatprep.subr.bf16.mxu0 %v2988_v49 }
 0x3aa   :  { %2991 = vmatpush1.bf16.msra.mxu0 %v2990_v54 }
 0x3ab   :  { %2993 = vmatprep.subr.bf16.mxu0 %v2992_v55 }
 0x3ae   :  { %2995 = vmatpush1.bf16.msra.mxu0 %v2994_v58 }
 0x3b1   :  { %2608 = vmatmul.mubr.msk.f32.vlgmr.msra.gmra.mrb[4].mxu0 %vm734_vm7, %v4316_v59 }
 0x40d   :  { %v908_v14 = vpop.f32.mrb[2].mxu1 }
 0x40e   :  { %v910_v15 = vpop.f32.mrb[3].mxu1 }
 0x484   :  { %v804_v22 = vpop.f32.mrb[4].mxu0 }
 0x485   :  { %v3231_v24 = vadd.f32 %v908_v14, %v804_v22  ;;  %v806_v25 = vpop.f32.mrb[5].mxu0 }
 0x486   :  { %v3232_v26 = vadd.f32 %v910_v15, %v806_v25 }
 0x487   :  { %v927_v27 = vadd.f32 %v3231_v24, %v920_v21 }
 0x488   :  { %v928_v28 = vadd.f32 %v3232_v26, %v924_v23 }
 0x489   :  { %929 = vst [vmem:[#allocation7] sm:$0xff] %v927_v27 }
 0x48a   :  { %930 = vst [vmem:[#allocation7 + $0x8] sm:$0xff] %v928_v28 }
 0x48b LB: > { %v3028_v31 = vpack.c.bf16 %v4330_v63, %v4324_v61  ;;  %v3030_v32 = vpack.c.bf16 %v4327_v62, %v4321_v60  ;;  %v3032_v33 = vpack.c.bf16 %v4342_v3, %v4336_v1  ;;  %v3034_v34 = vpack.c.bf16 %v4339_v2, %v4333_v0  ;;  %s4397_s20 = sld [smem:[#allocation9 + %s3866_s24]]  ;;  %s959_s27 = sshra.s32 %s3866_s24, 3  ;;  %s3866_s24 = sphi %s4381_s24, %s952_s24   ;;  %v3862_v30 = vphi %v4379_v30, %v1089_v30   ;;  %v3858_v29 = vphi %v4377_v29, %v1083_v29  }
 0x48c   : > { %v3940_v35 = vmov 0.0   ;;  %v3036_v36 = vpack.c.bf16 %v4354_v9, %v4348_v7  ;;  %v3038_v37 = vpack.c.bf16 %v4351_v8, %v4345_v5  ;;  %v3040_v38 = vpack.c.bf16 %v4366_v13, %v4360_v11  ;;  %s962_s5 = sand.u32 7, %s3866_s24  ;;  %s2636_s6 = sshll.u32 %s959_s27, 4 }
 0x48d   : > { %3029 = vmatprep.subr.bf16.mxu0 %v3028_v31  ;;  %1035 = vmatprep.mubr.f32.mxu0 %v3940_v35  ;;  %v3042_v39 = vpack.c.bf16 %v4363_v12, %v4357_v10  ;;  %v3941_v42 = vmov 1966171168   ;;  %s965_s1 = sadd.s32 %s2636_s6, %s962_s5  ;;  %s3942_s13 = smov 64   ;;  %vm1091_vm8 = vcmask 516096  }
 0x48e   : > { %3031 = vmatpush1.bf16.msra.mxu0 %v3030_v32  ;;  %v1046_v43 = vunpack.c.l.s4 %v3941_v42  ;;  %s966_s21 = scalar_lea.vmem [#allocation7], %s965_s1  ;;  %s1090_s8 = scalar_lea.vmem [#allocation5], %s3866_s24 }
 0x48f   : > { %3033 = vmatprep.subr.bf16.mxu0 %v3032_v33  ;;  %s952_s24 = sadd.s32 1, %s3866_s24  }
 0x490   : > { %v1047_v44 = vunpack.c.0.s8 %v1046_v43  ;;  %p949_p1 = scmp.ge.s32.totalorder %s952_s24, 8  }
 0x491   : > { %v956_v40 = vstv %s4397_s20  ;;  %v967_v50 = vld [vmem:[%s966_s21] ss:$8 sm:$0x3]  ;;  %s4767_s29 = sld [smem:[#allocation62_spill]] (%p949_p1)  ;;  %3056 = vmatprep.subr.bf16.mxu1 (%p949_p1), %v3936_v4  ;;  %2812 = vmatprep.mubr.msk.f32.mxu1 (%p949_p1), %vm3938_vm4, %v3939_v6  ;;  %v4448_v5 = vand.u32 (%p949_p1), 127, %v917_v16  ;;  %v1199_v13 = vld [vmem:[#allocation25] sm:$0xff] (%p949_p1) }
 0x492   : > { %3035 = vmatpush1.bf16.msra.mxu0 %v3034_v34  ;;  %v957_v41 = vmul.f32 %v3862_v30, %v956_v40  ;;  %v4412_v46 = vsub.s32 %v1047_v44, %v4369_v17  ;;  %v958_v15 = vmul.f32 %v3858_v29, %v956_v40  ;;  %v2612_v7 = vld [vmem:[#allocation23] ss:$0 sm:$0xff] (%p949_p1)  ;;  %s4768_s10 = sld [smem:[#allocation63_spill]] (%p949_p1)  ;;  %v1279_v43 = vld [vmem:[#allocation26 + $0x18] sm:$0xff] (%p949_p1)  ;;  %s4769_s11 = sld [smem:[#allocation64_spill]] (%p949_p1) }
 0x493   : > { %3037 = vmatprep.subr.bf16.mxu0 %v3036_v36  ;;  %vm1186_vm9 = vcmp.eq.s32.totalorder (%p949_p1), %v4448_v5, 0  ;;  %v1277_v42 = vld [vmem:[#allocation26 + $0x8] sm:$0xff] (%p949_p1)  ;;  %s4544_s15 = smov (%p949_p1), 0  }
 0x494   :  { %v3075_v44 = vpack.c.bf16 (%p949_p1), %v1279_v43, %v1277_v42 }
 0x496   : > { %3039 = vmatpush1.bf16.msra.mxu0 %v3038_v37  ;;  %v4454_v37 = vcvt.s32.f32 (%p949_p1), %v4448_v5 }
 0x497   : > { %3041 = vmatprep.subr.bf16.mxu0 %v3040_v38  ;;  %v1094_v31 = vld [vmem:[%s4767_s29] sm:$0xff] (%p949_p1)  ;;  %v1095_v32 = vld [vmem:[%s4767_s29 + $0x8] sm:$0xff] (%p949_p1)  ;;  %v1096_v33 = vld [vmem:[%s4767_s29 + $0x10] sm:$0xff] (%p949_p1) }
 0x498   :  { %v3045_v34 = vpack.c.bf16 (%p949_p1), %v1095_v32, %v1094_v31  ;;  %v1097_v35 = vld [vmem:[%s4767_s29 + $0x18] sm:$0xff] (%p949_p1)  ;;  %v1098_v61 = vld [vmem:[%s4767_s29 + $0x20] sm:$0xff] (%p949_p1)  ;;  %v1099_v62 = vld [vmem:[%s4767_s29 + $0x28] sm:$0xff] (%p949_p1) }
 0x499   :  { %v3048_v60 = vpack.c.bf16 (%p949_p1), %v1097_v35, %v1096_v33  ;;  %v3051_v63 = vpack.c.bf16 (%p949_p1), %v1099_v62, %v1098_v61  ;;  %v1100_v0 = vld [vmem:[%s4767_s29 + $0x30] sm:$0xff] (%p949_p1)  ;;  %v1101_v1 = vld [vmem:[%s4767_s29 + $0x38] sm:$0xff] (%p949_p1)  ;;  %v1292_v33 = vld [vmem:[%s4768_s10 + $0x40] sm:$0xff] (%p949_p1) }
 0x49a   : > { %3043 = vmatpush1.bf16.msra.mxu0 %v3042_v39  ;;  %v3054_v2 = vpack.c.bf16 (%p949_p1), %v1101_v1, %v1100_v0  ;;  %v1295_v31 = vld [vmem:[%s4768_s10 + $0x58] sm:$0xff] (%p949_p1)  ;;  %v1298_v0 = vld [vmem:[%s4768_s10 + $0x70] sm:$0xff] (%p949_p1)  ;;  %v1453_v42 = vld [vmem:[%s4769_s11 + $0x40] sm:$0xff] (%p949_p1) }
 0x49b   :  { %3044 = vmatprep.subr.bf16.mxu0 (%p949_p1), %v3936_v4  ;;  %v1299_v61 = vld [vmem:[%s4768_s10 + $0x78] sm:$0xff] (%p949_p1)  ;;  %v1455_v43 = vld [vmem:[%s4769_s11 + $0x50] sm:$0xff] (%p949_p1) }
 0x49d   : > { %2611 = vmatmul.mubr.msk.f32.vlgmr.msra.gmra.mrb[0].mxu0 %vm734_vm7, %v957_v41 }
 0x49e   :  { %2805 = vmatprep.mubr.msk.f32.mxu0 (%p949_p1), %vm3938_vm4, %v3939_v6  ;;  %3046 = vmatpush3.bf16.msra.mxu0 (%p949_p1), %v3045_v34  ;;  %v1294_v34 = vld [vmem:[%s4768_s10 + $0x50] sm:$0xff] (%p949_p1) }
 0x49f   :  { %3047 = vmatprep.subr.bf16.mxu0 (%p949_p1), %v3936_v4  ;;  %v3069_v35 = vpack.c.bf16 (%p949_p1), %v1294_v34, %v1292_v33 }
 0x4a2   :  { %3049 = vmatpush3.bf16.msra.mxu0 (%p949_p1), %v3048_v60  ;;  %v1297_v60 = vld [vmem:[%s4768_s10 + $0x68] sm:$0xff] (%p949_p1) }
 0x4a3   :  { %3050 = vmatprep.subr.bf16.mxu0 (%p949_p1), %v3936_v4  ;;  %v3071_v62 = vpack.c.bf16 (%p949_p1), %v1299_v61, %v1297_v60 }
 0x4a6   :  { %3052 = vmatpush3.bf16.msra.mxu0 (%p949_p1), %v3051_v63  ;;  %v1296_v63 = vld [vmem:[%s4768_s10 + $0x60] sm:$0xff] (%p949_p1) }
 0x4a7   :  { %3053 = vmatprep.subr.bf16.mxu0 (%p949_p1), %v3936_v4  ;;  %v3073_v1 = vpack.c.bf16 (%p949_p1), %v1298_v0, %v1296_v63  ;;  %v4542_v63 = vmov (%p949_p1), 0.0  }
 0x4aa   :  { %3055 = vmatpush3.bf16.msra.mxu0 (%p949_p1), %v3054_v2 }
 0x570   : > { %v1037_v45 = vpop.f32.mrb[0].mxu0 }
 0x571   : > { %v1039_v47 = vpop.f32.mrb[1].mxu0 }
 0x572   : > { %v1044_v48 = vcombine.low %v1037_v45, %v1039_v47  ;;  %v1276_v45 = vld [vmem:[#allocation26] sm:$0xff] (%p949_p1)  ;;  %v1278_v47 = vld [vmem:[#allocation26 + $0x10] sm:$0xff] (%p949_p1) }
 0x574   : > { %v1051_v49 = vrot.slane %v1044_v48, %v4412_v46  ;;  %v3077_v48 = vpack.c.bf16 (%p949_p1), %v1278_v47, %v1276_v45  ;;  %v1460_v45 = vld [vmem:[%s4769_s11 + $0x78] sm:$0xff] (%p949_p1)  ;;  %v3093_v47 = vpack.c.bf16 (%p949_p1), %v1455_v43, %v1453_v42 }
 0x576   : > { %v1058_v51 = vrot.slane %v1051_v49, %v4412_v46  ;;  %v1281_v49 = vld [vmem:[#allocation26 + $0x28] sm:$0xff] (%p949_p1) }
 0x578   : > { %v1060_v52 = vadd.f32 %v1058_v51, %v967_v50  ;;  %v1283_v50 = vld [vmem:[#allocation26 + $0x38] sm:$0xff] (%p949_p1)  ;;  %v1280_v51 = vld [vmem:[#allocation26 + $0x20] sm:$0xff] (%p949_p1) }
 0x57a   : > { %v1061_v53 = vmul.f32 0.5, %v1060_v52  ;;  %v1066_v54 = vrot.slane %v1060_v52, 1 }
 0x57c   : > { %3360 = vtanh.f32 %v1061_v53  ;;  %v1282_v53 = vld [vmem:[#allocation26 + $0x30] sm:$0xff] (%p949_p1) }
 0x57d   : > { %3362 = vtanh.f32 %v1066_v54  ;;  %v1285_v54 = vld [vmem:[%s4768_s10 + $0x8] sm:$0xff] (%p949_p1) }
 0x586   : > { %v3361_v55 = vpop.eup %3360 }
 0x587   : > { %v1063_v56 = vmul.f32 0.5, %v3361_v55  ;;  %v3363_v58 = vpop.eup %3362  ;;  %v1287_v55 = vld [vmem:[%s4768_s10 + $0x18] sm:$0xff] (%p949_p1) }
 0x589   : > { %v1064_v57 = vadd.f32 0.5, %v1063_v56  ;;  %v3081_v56 = vpack.c.bf16 (%p949_p1), %v1282_v53, %v1280_v51 }
 0x58b   : > { %v1078_v14 = vmul.f32 %v3363_v58, %v1064_v57  ;;  %v1077_v19 = vmul.f32 %v1064_v57, %v958_v15  ;;  %v3059_v57 = vpack.c.bf16 (%p949_p1), %v1287_v55, %v1285_v54  ;;  %v1284_v58 = vld [vmem:[%s4768_s10] sm:$0xff] (%p949_p1)  ;;  %v1446_v15 = vld [vmem:[%s4769_s11 + $0x8] sm:$0xff] (%p949_p1)  ;;  %v4506_v55 = vld [vmem:[#allocation28 + $0x8] sm:$0xff] (%p949_p1) }
 0x58c   :  { %v4504_v54 = vld [vmem:[#allocation28] sm:$0xff] (%p949_p1) }
 0x58d   : > { %1080 = vrot.lane.b32.xlu0 %v1078_v14, %s3942_s13  ;;  %v1286_v14 = vld [vmem:[%s4768_s10 + $0x10] sm:$0xff] (%p949_p1)  ;;  %3060 = vmatprep.subr.bf16.mxu0 (%p949_p1), %v3059_v57  ;;  %v4510_v57 = vld [vmem:[#allocation28 + $0x18] sm:$0xff] (%p949_p1) }
 0x591   : > { %1069 = vrot.lane.b32.xlu0 %v1060_v52, %s3942_s13  ;;  %v3079_v52 = vpack.c.bf16 (%p949_p1), %v1283_v50, %v1281_v49  ;;  %v1457_v49 = vld [vmem:[%s4769_s11 + $0x60] sm:$0xff] (%p949_p1)  ;;  %v1459_v50 = vld [vmem:[%s4769_s11 + $0x70] sm:$0xff] (%p949_p1) }
 0x592   :  { %v3097_v51 = vpack.c.bf16 (%p949_p1), %v1459_v50, %v1457_v49 }
 0x5ff   : > { %v1081_v21 = vpop.permute.xlu0 %1080 }
 0x600   : > { %v1083_v29 = vadd.f32 %v1081_v21, %v1077_v19   ;;  %v3061_v19 = vpack.c.bf16 (%p949_p1), %v1286_v14, %v1284_v58  ;;  %v1448_v21 = vld [vmem:[%s4769_s11 + $0x18] sm:$0xff] (%p949_p1)  ;;  %v4512_v58 = vld [vmem:[#allocation28 + $0x20] sm:$0xff] (%p949_p1)  ;;  %v4514_v14 = vld [vmem:[#allocation28 + $0x28] sm:$0xff] (%p949_p1) }
 0x602   : > { %3364 = vtanh.f32 %v1083_v29  ;;  %v1200_v29 = vld [vmem:[#allocation25 + $0x8] sm:$0xff] (%p949_p1) }
 0x603   : > { %v1070_v23 = vpop.permute.xlu0 %1069  ;;  %v3057_v36 = vpack.c.bf16 (%p949_p1), %v1200_v29, %v1199_v13  ;;  %v1449_v29 = vld [vmem:[%s4769_s11 + $0x20] sm:$0xff] (%p949_p1) }
 0x604   : > { %v1071_v24 = vrot.slane %v1070_v23, 1  ;;  %v1289_v23 = vld [vmem:[%s4768_s10 + $0x28] sm:$0xff] (%p949_p1) }
 0x605   :  { %3058 = vmatpush3.bf16.msra.mxu1 (%p949_p1), %v3057_v36  ;;  %v1451_v36 = vld [vmem:[%s4769_s11 + $0x30] sm:$0xff] (%p949_p1) }
 0x606   : > { %v1073_v25 = vmul.f32 0.5, %v1071_v24  ;;  %3076 = vmatprep.subr.bf16.mxu1 (%p949_p1), %v3075_v44  ;;  %v1291_v24 = vld [vmem:[%s4768_s10 + $0x38] sm:$0xff] (%p949_p1)  ;;  %v1458_v44 = vld [vmem:[%s4769_s11 + $0x68] sm:$0xff] (%p949_p1) }
 0x608   : > { %3366 = vtanh.f32 %v1073_v25  ;;  %v3063_v25 = vpack.c.bf16 (%p949_p1), %v1291_v24, %v1289_v23  ;;  %v4526_v23 = vld [vmem:[#allocation28 + $0x58] sm:$0xff] (%p949_p1)  ;;  %v4528_v24 = vld [vmem:[#allocation28 + $0x60] sm:$0xff] (%p949_p1) }
 0x60c   : > { %v3365_v22 = vpop.eup %3364 }
 0x60d   : > { %1086 = vrot.lane.b32.xlu1 %v3365_v22, %s3942_s13  ;;  %v3083_v22 = vpack.c.bf16 (%p949_p1), %v1448_v21, %v1446_v15  ;;  %v4516_v15 = vld [vmem:[#allocation28 + $0x30] sm:$0xff] (%p949_p1)  ;;  %v4520_v21 = vld [vmem:[#allocation28 + $0x40] sm:$0xff] (%p949_p1) }
 0x612   : > { %v3367_v26 = vpop.eup %3366 }
 0x613   : > { %v1075_v27 = vmul.f32 0.5, %v3367_v26  ;;  %v1288_v26 = vld [vmem:[%s4768_s10 + $0x20] sm:$0xff] (%p949_p1) }
 0x615   : > { %v1076_v28 = vadd.f32 0.5, %v1075_v27  ;;  %v1290_v27 = vld [vmem:[%s4768_s10 + $0x30] sm:$0xff] (%p949_p1) }
 0x67c   :  { %951 = sbr.rel (!%p949_p1) target bundleno = 1163 (0x48b), region = 284 }
 0x67f   : > { %v1087_v30 = vpop.permute.xlu1 %1086 }
 0x680   : > { %v1089_v30 = vmul.f32 %v1087_v30, %v1076_v28   ;;  %v3065_v28 = vpack.c.bf16 (%p949_p1), %v1290_v27, %v1288_v26  ;;  %v4532_v26 = vld [vmem:[#allocation28 + $0x70] sm:$0xff] (%p949_p1)  ;;  %v4534_v27 = vld [vmem:[#allocation28 + $0x78] sm:$0xff] (%p949_p1) }
 0x682   : > { %1092 = vst.msk [vmem:[%s1090_s8] sm:$0x1] %vm1091_vm8, %v1089_v30  ;;  %v1293_v30 = vld [vmem:[%s4768_s10 + $0x48] sm:$0xff] (%p949_p1) }
 0x683   :  { %v3067_v32 = vpack.c.bf16 %v1295_v31, %v1293_v30 }
 0x689   :  { %v4442_v3 = vld [vmem:[#allocation5] sm:$0xff] }
 0x68a   :  { %2806 = vmatmul.mubr.msk.f32.vlgmr.msra.gmra.mrb[0].mxu0 %vm734_vm7, %v4442_v3 }
 0x68b   :  { %1364 = vmatprep.mubr.f32.mxu0 %v3939_v6  ;;  %3062 = vmatpush1.bf16.msra.mxu0 %v3061_v19  ;;  %v4518_v19 = vld [vmem:[#allocation28 + $0x38] sm:$0xff] }
 0x68c   :  { %3064 = vmatprep.subr.bf16.mxu0 %v3063_v25  ;;  %v4530_v25 = vld [vmem:[#allocation28 + $0x68] sm:$0xff] }
 0x68f   :  { %3066 = vmatpush1.bf16.msra.mxu0 %v3065_v28  ;;  %v1534_v28 = vld [vmem:[#allocation29] sm:$0x3] }
 0x690   :  { %3068 = vmatprep.subr.bf16.mxu0 %v3067_v32  ;;  %v1539_v30 = vrot.slane %v1534_v28, %v919_v18  ;;  %v1543_v32 = vrot.slane %v1534_v28, %v923_v20 }
 0x693   :  { %3070 = vmatpush1.bf16.msra.mxu0 %v3069_v35 }
 0x694   :  { %3072 = vmatprep.subr.bf16.mxu0 %v3071_v62  ;;  %v4540_v62 = vmov 0.0  }
 0x697   :  { %3074 = vmatpush1.bf16.msra.mxu0 %v3073_v1 }
 0x69a   :  { %2616 = vmatmul.mubr.msk.f32.vlgmr.msra.gmra.mrb[2].mxu0 %vm734_vm7, %v4316_v59  ;;  %v1456_v59 = vld [vmem:[%s4769_s11 + $0x58] sm:$0xff] }
 0x75d   :  { %v1178_v8 = vpop.f32.mrb[0].mxu0 }
 0x75e   :  { %v1179_v9 = vadd.f32 %v2612_v7, %v1178_v8  ;;  %v2807_v10 = vpop.f32.mrb[1].mxu0  ;;  %v1445_v8 = vld [vmem:[%s4769_s11] sm:$0xff] }
 0x75f   :  { %v1450_v10 = vld [vmem:[%s4769_s11 + $0x28] sm:$0xff] }
 0x760   :  { %1182 = vst.msk [vmem:[#allocation38] sm:$0xff] %vm546_vm0, %v1179_v9  ;;  %v1187_v11 = vsel %vm1186_vm9, -1e+30, %v1179_v9  ;;  %v1447_v9 = vld [vmem:[%s4769_s11 + $0x10] sm:$0xff] }
 0x761   :  { %v1188_v12 = vsel %vm546_vm0, %v1187_v11, -inf }
 0x762   :  { %1189 = vmax.xlane.f32.xlu0 %v1188_v12  ;;  %v3085_v12 = vpack.c.bf16 %v1447_v9, %v1445_v8 }
 0x7ef   :  { %v1190_v16 = vpop.xlane.xlu0 %1189 }
 0x7f0   :  { %vm1191_vm10 = vcmp.eq.f32.partialorder %v1187_v11, %v1190_v16  ;;  %v1452_v11 = vld [vmem:[%s4769_s11 + $0x38] sm:$0xff] }
 0x7f1   :  { %v1192_v38 = vsel %vm1191_vm10, %v4454_v37, 1e+09  ;;  %v3087_v13 = vpack.c.bf16 %v1452_v11, %v1450_v10 }
 0x7f2   :  { %v1193_v39 = vsel %vm546_vm0, %v1192_v38, inf  ;;  %v1454_v38 = vld [vmem:[%s4769_s11 + $0x48] sm:$0xff] }
 0x7f3   :  { %1194 = vmin.xlane.f32.xlu0 %v1193_v39  ;;  %v3089_v39 = vpack.c.bf16 %v1451_v36, %v1449_v29 }
 0x880   :  { %v4458_v40 = vpop.xlane.xlu0 %1194 }
 0x881   :  { %vm1196_vm11 = vcmp.eq.f32.partialorder %v4454_v37, %v4458_v40 }
 0x882   :  { %v2614_v41 = vsel %vm1196_vm11, 1.0, %v3939_v6 }
 0x883   :  { %2813 = vmatmul.mubr.msk.f32.vlgmr.msra.gmra.mrb[0].mxu1 %vm546_vm0, %v2614_v41  ;;  %v3091_v41 = vpack.c.bf16 %v1456_v59, %v1454_v38 }
 0x884   :  { %1438 = vmatprep.mubr.f32.mxu1 %v3939_v6  ;;  %3078 = vmatpush1.bf16.msra.mxu1 %v3077_v48  ;;  %v3095_v48 = vpack.c.bf16 %v1460_v45, %v1458_v44 }
 0x885   :  { %3080 = vmatprep.subr.bf16.mxu1 %v3079_v52  ;;  %v1366_v52 = vpop.f32.mrb[2].mxu0 }
 0x886   :  { %v1368_v53 = vpop.f32.mrb[3].mxu0 }
 0x888   :  { %3082 = vmatpush1.bf16.msra.mxu1 %v3081_v56  ;;  %v4508_v56 = vld [vmem:[#allocation28 + $0x10] sm:$0xff] }
 0x889   :  { %3084 = vmatprep.subr.bf16.mxu1 %v3083_v22  ;;  %v4524_v22 = vld [vmem:[#allocation28 + $0x50] sm:$0xff] }
 0x956   :  { %v1270_v2 = vpop.f32.mrb[0].mxu1 }
 0x957   :  { %1274 = vst.msk [vmem:[#allocation4] sm:$0xff] %vm469_vm6, %v1270_v2  ;;  %v2814_v7 = vpop.f32.mrb[1].mxu1 }
 0x95e   :  { %v1275_v16 = vld [vmem:[#allocation4] sm:$0xff] }
 0x95f   :  { %2617 = vmatmul.mubr.msk.f32.vlgmr.msra.gmra.mrb[2].mxu1 %vm469_vm6, %v1275_v16 }
 0x960   :  { %3086 = vmatpush1.bf16.msra.mxu1 %v3085_v12  ;;  %1525 = vmatprep.mubr.f32.mxu1 %v3939_v6 }
 0x961   :  { %3088 = vmatprep.subr.bf16.mxu1 %v3087_v13 }
 0x964   :  { %3090 = vmatpush1.bf16.msra.mxu1 %v3089_v39 }
 0x965   :  { %3092 = vmatprep.subr.bf16.mxu1 %v3091_v41 }
 0x968   :  { %3094 = vmatpush1.bf16.msra.mxu1 %v3093_v47 }
 0x969   :  { %3096 = vmatprep.subr.bf16.mxu1 %v3095_v48 }
 0x96c   :  { %3098 = vmatpush1.bf16.msra.mxu1 %v3097_v51 }
 0x96f   :  { %2618 = vmatmul.mubr.msk.f32.vlgmr.msra.gmra.mrb[2].mxu1 %vm734_vm7, %v4442_v3  ;;  %v4522_v3 = vld [vmem:[#allocation28 + $0x48] sm:$0xff] }
 0xa42   :  { %v1527_v31 = vpop.f32.mrb[2].mxu1 }
 0xa43   :  { %v3235_v33 = vadd.f32 %v1527_v31, %v1366_v52  ;;  %v1529_v34 = vpop.f32.mrb[3].mxu1 }
 0xa44   :  { %v3236_v35 = vadd.f32 %v1529_v34, %v1368_v53 }
 0xa45   :  { %v1546_v60 = vadd.f32 %v3235_v33, %v1539_v30 }
 0xa46   :  { %v1547_v61 = vadd.f32 %v3236_v35, %v1543_v32 }
 0xa47   :  { %1548 = vst [vmem:[#allocation7] sm:$0xff] %v1546_v60 }
 0xa48   :  { %1549 = vst [vmem:[#allocation7 + $0x8] sm:$0xff] %v1547_v61 }
 0xa49 LB: > { %v3099_v17 = vpack.c.bf16 %v4510_v57, %v4506_v55  ;;  %v3101_v18 = vpack.c.bf16 %v4508_v56, %v4504_v54  ;;  %v3103_v20 = vpack.c.bf16 %v4518_v19, %v4514_v14  ;;  %v3105_v0 = vpack.c.bf16 %v4516_v15, %v4512_v58  ;;  %s4560_s19 = sld [smem:[#allocation9 + %s3878_s15]]  ;;  %s1578_s25 = sshra.s32 %s3878_s15, 3  ;;  %s3878_s15 = sphi %s4544_s15, %s1571_s15   ;;  %v3874_v63 = vphi %v4542_v63, %v1708_v63   ;;  %v3870_v62 = vphi %v4540_v62, %v1702_v62  }
 0xa4a   : > { %v3943_v1 = vmov 0.0   ;;  %v3107_v2 = vpack.c.bf16 %v4526_v23, %v4522_v3  ;;  %v3109_v7 = vpack.c.bf16 %v4524_v22, %v4520_v21  ;;  %v3111_v8 = vpack.c.bf16 %v4534_v27, %v4530_v25  ;;  %s1581_s16 = sand.u32 7, %s3878_s15  ;;  %s2637_s18 = sshll.u32 %s1578_s25, 4 }
 0xa4b   : > { %3100 = vmatprep.subr.bf16.mxu0 %v3099_v17  ;;  %1654 = vmatprep.mubr.f32.mxu0 %v3943_v1  ;;  %v3113_v9 = vpack.c.bf16 %v4532_v26, %v4528_v24  ;;  %s1584_s3 = sadd.s32 %s2637_s18, %s1581_s16  ;;  %s3944_s14 = smov 64  }
 0xa4c   : > { %3102 = vmatpush1.bf16.msra.mxu0 %v3101_v18  ;;  %s1585_s30 = scalar_lea.vmem [#allocation7], %s1584_s3  ;;  %s1709_s0 = scalar_lea.vmem [#allocation6], %s3878_s15 }
 0xa4d   : > { %3104 = vmatprep.subr.bf16.mxu0 %v3103_v20  ;;  %s1571_s15 = sadd.s32 1, %s3878_s15  }
 0xa4e   : > { %p1568_p2 = scmp.ge.s32.totalorder %s1571_s15, 8  }
 0xa4f   : > { %v1575_v10 = vstv %s4560_s19  ;;  %v1586_v16 = vld [vmem:[%s1585_s30] ss:$8 sm:$0x3]  ;;  %s4770_s22 = sld [smem:[#allocation57_spill]] (%p1568_p2)  ;;  %v1713_v34 = vld [vmem:[#allocation31] sm:$0xff] (%p1568_p2)  ;;  %v1714_v35 = vld [vmem:[#allocation31 + $0x8] sm:$0xff] (%p1568_p2)  ;;  %2834 = vmatprep.subr.mxu1 (%p1568_p2), %v3939_v6  ;;  %2836 = vmatprep.mubr.msk.f32.mxu1 (%p1568_p2), %vm3938_vm4, %v3939_v6 }
 0xa50   : > { %3106 = vmatpush1.bf16.msra.mxu0 %v3105_v0  ;;  %v1576_v11 = vmul.f32 %v3874_v63, %v1575_v10  ;;  %v1577_v48 = vmul.f32 %v3870_v62, %v1575_v10  ;;  %v1715_v60 = vld [vmem:[#allocation31 + $0x10] sm:$0xff] (%p1568_p2)  ;;  %s4771_s12 = sld [smem:[#allocation58_spill]] (%p1568_p2)  ;;  %v3116_v61 = vpack.c.bf16 (%p1568_p2), %v1714_v35, %v1713_v34  ;;  %v1716_v17 = vld [vmem:[#allocation31 + $0x18] sm:$0xff] (%p1568_p2)  ;;  %v3945_v18 = vmov (%p1568_p2), 0   ;;  %v1717_v55 = vld [vmem:[#allocation31 + $0x20] sm:$0xff] (%p1568_p2)  ;;  %s4772_s2 = sld [smem:[#allocation67_spill]] (%p1568_p2) }
 0xa51   : > { %3108 = vmatprep.subr.bf16.mxu0 %v3107_v2  ;;  %3376 = vset.pattern.permute.xlu0 (%p1568_p2), %v3945_v18  ;;  %v1718_v56 = vld [vmem:[#allocation31 + $0x28] sm:$0xff] (%p1568_p2)  ;;  %v1719_v14 = vld [vmem:[#allocation31 + $0x30] sm:$0xff] (%p1568_p2)  ;;  %v1720_v15 = vld [vmem:[#allocation31 + $0x38] sm:$0xff] (%p1568_p2)  ;;  %vm1817_vm13 = vcmask (%p1568_p2), 64512   ;;  %s4773_s7 = sld [smem:[#allocation69_spill]] (%p1568_p2)  ;;  %s4774_s23 = sld [smem:[#allocation56_spill]] (%p1568_p2) }
 0xa52   :  { %3377 = vset.pattern.permute.xlu1 (%p1568_p2), %v3945_v18  ;;  %v3122_v58 = vpack.c.bf16 (%p1568_p2), %v1718_v56, %v1717_v55  ;;  %v3125_v19 = vpack.c.bf16 (%p1568_p2), %v1720_v15, %v1719_v14  ;;  %v1988_v35 = vld [vmem:[#allocation34 + $0x40] sm:$0xff] (%p1568_p2)  ;;  %v1991_v18 = vld [vmem:[#allocation34 + $0x58] sm:$0xff] (%p1568_p2)  ;;  %v1993_v55 = vld [vmem:[#allocation34 + $0x68] sm:$0xff] (%p1568_p2) }
 0xa54   : > { %3110 = vmatpush1.bf16.msra.mxu0 %v3109_v7 }
 0xa55   : > { %3112 = vmatprep.subr.bf16.mxu0 %v3111_v8  ;;  %v1802_v54 = vld [vmem:[%s4770_s22] sm:$0xff] (%p1568_p2) }
 0xa56   :  { %v1809_v57 = vld [vmem:[%s4771_s12] sm:$0xff] (%p1568_p2)  ;;  %v1965_v22 = vld [vmem:[%s4772_s2 + $0x8] sm:$0xff] (%p1568_p2)  ;;  %v1966_v24 = vld [vmem:[%s4772_s2 + $0x10] sm:$0xff] (%p1568_p2) }
 0xa57   :  { %v1964_v3 = vld [vmem:[%s4772_s2] sm:$0xff] (%p1568_p2)  ;;  %v1967_v25 = vld [vmem:[%s4772_s2 + $0x18] sm:$0xff] (%p1568_p2)  ;;  %v1970_v20 = vld [vmem:[%s4772_s2 + $0x30] sm:$0xff] (%p1568_p2) }
 0xa58   : > { %3114 = vmatpush1.bf16.msra.mxu0 %v3113_v9  ;;  %v3152_v23 = vpack.c.bf16 (%p1568_p2), %v1965_v22, %v1964_v3  ;;  %v3155_v26 = vpack.c.bf16 (%p1568_p2), %v1967_v25, %v1966_v24  ;;  %v1968_v27 = vld [vmem:[%s4772_s2 + $0x20] sm:$0xff] (%p1568_p2)  ;;  %v1971_v0 = vld [vmem:[%s4772_s2 + $0x38] sm:$0xff] (%p1568_p2)  ;;  %v1973_v7 = vld [vmem:[%s4772_s2 + $0x48] sm:$0xff] (%p1568_p2) }
 0xa59   :  { %3115 = vmatprep.subr.bf16.mxu0 (%p1568_p2), %v3936_v4  ;;  %v3161_v1 = vpack.c.bf16 (%p1568_p2), %v1971_v0, %v1970_v20  ;;  %v1972_v2 = vld [vmem:[%s4772_s2 + $0x40] sm:$0xff] (%p1568_p2)  ;;  %v1974_v9 = vld [vmem:[%s4772_s2 + $0x50] sm:$0xff] (%p1568_p2)  ;;  %v1975_v10 = vld [vmem:[%s4772_s2 + $0x58] sm:$0xff] (%p1568_p2) }
 0xa5a   :  { %v3164_v8 = vpack.c.bf16 (%p1568_p2), %v1973_v7, %v1972_v2  ;;  %v2146_v15 = vld [vmem:[%s4773_s7] sm:$0xff] (%p1568_p2)  ;;  %v2149_v24 = vld [vmem:[%s4773_s7 + $0x18] sm:$0xff] (%p1568_p2)  ;;  %v2152_v0 = vld [vmem:[%s4773_s7 + $0x30] sm:$0xff] (%p1568_p2) }
 0xa5b   : > { %2621 = vmatmul.mubr.msk.f32.vlgmr.msra.gmra.mrb[0].mxu0 %vm734_vm7, %v1576_v11  ;;  %v3167_v11 = vpack.c.bf16 (%p1568_p2), %v1975_v10, %v1974_v9  ;;  %v2154_v7 = vld [vmem:[%s4773_s7 + $0x40] sm:$0xff] (%p1568_p2)  ;;  %v2156_v10 = vld [vmem:[%s4773_s7 + $0x50] sm:$0xff] (%p1568_p2) }
 0xa5c   :  { %2831 = vmatprep.mubr.msk.f32.mxu0 (%p1568_p2), %vm3938_vm4, %v3939_v6  ;;  %3117 = vmatpush3.bf16.msra.mxu0 (%p1568_p2), %v3116_v61 }
 0xa5d   :  { %3118 = vmatprep.subr.bf16.mxu0 (%p1568_p2), %v3936_v4 }
 0xb2e   : > { %v1656_v12 = vpop.f32.mrb[0].mxu0 }
 0xb2f   : > { %v1658_v13 = vpop.f32.mrb[1].mxu0 }
 0xb30   : > { %v1663_v29 = vcombine.low %v1656_v12, %v1658_v13  ;;  %v1976_v12 = vld [vmem:[%s4772_s2 + $0x60] sm:$0xff] (%p1568_p2)  ;;  %v1977_v13 = vld [vmem:[%s4772_s2 + $0x68] sm:$0xff] (%p1568_p2) }
 0xb32   : > { %v1670_v36 = vrot.slane %v1663_v29, %v4412_v46  ;;  %v3170_v29 = vpack.c.bf16 (%p1568_p2), %v1977_v13, %v1976_v12  ;;  %v2158_v13 = vld [vmem:[%s4773_s7 + $0x60] sm:$0xff] (%p1568_p2) }
 0xb34   : > { %v1677_v38 = vrot.slane %v1670_v36, %v4412_v46  ;;  %v3119_v46 = vpack.c.bf16 (%p1568_p2), %v1716_v17, %v1715_v60  ;;  %v1978_v36 = vld [vmem:[%s4772_s2 + $0x70] sm:$0xff] (%p1568_p2)  ;;  %v1990_v17 = vld [vmem:[#allocation34 + $0x50] sm:$0xff] (%p1568_p2) }
 0xb35   :  { %v1989_v60 = vld [vmem:[#allocation34 + $0x48] sm:$0xff] (%p1568_p2) }
 0xb36   : > { %v1679_v59 = vadd.f32 %v1677_v38, %v1586_v16  ;;  %3120 = vmatpush3.bf16.msra.mxu0 (%p1568_p2), %v3119_v46  ;;  %v1979_v16 = vld [vmem:[%s4772_s2 + $0x78] sm:$0xff] (%p1568_p2)  ;;  %v3140_v61 = vpack.c.bf16 (%p1568_p2), %v1989_v60, %v1988_v35  ;;  %v3143_v46 = vpack.c.bf16 (%p1568_p2), %v1991_v18, %v1990_v17  ;;  %v2399_v17 = vld [vmem:[%s4117_s17 + $0x28] sm:$0xff] (%p1568_p2)  ;;  %v2416_v18 = vld [vmem:[%s4117_s17 + $0xb0] sm:$0xff] (%p1568_p2) }
 0xb37   :  { %3121 = vmatprep.subr.bf16.mxu0 (%p1568_p2), %v3936_v4  ;;  %v3173_v38 = vpack.c.bf16 (%p1568_p2), %v1979_v16, %v1978_v36  ;;  %v2160_v16 = vld [vmem:[%s4773_s7 + $0x70] sm:$0xff] (%p1568_p2) }
 0xb38   : > { %v1680_v39 = vmul.f32 0.5, %v1679_v59  ;;  %v1685_v41 = vrot.slane %v1679_v59, 1 }
 0xb3a   : > { %3368 = vtanh.f32 %v1680_v39  ;;  %3123 = vmatpush3.bf16.msra.mxu0 (%p1568_p2), %v3122_v58  ;;  %v2622_v39 = vld [vmem:[#allocation32] ss:$0 sm:$0xff] (%p1568_p2) }
 0xb3b   : > { %3370 = vtanh.f32 %v1685_v41  ;;  %3124 = vmatprep.subr.bf16.mxu0 (%p1568_p2), %v3936_v4  ;;  %v1995_v58 = vld [vmem:[#allocation34 + $0x78] sm:$0xff] (%p1568_p2) }
 0xb3e   :  { %3126 = vmatpush3.bf16.msra.mxu0 (%p1568_p2), %v3125_v19  ;;  %v2147_v19 = vld [vmem:[%s4773_s7 + $0x8] sm:$0xff] (%p1568_p2) }
 0xb3f   :  { %3151 = vmatprep.subr.bf16.mxu0 (%p1568_p2), %v3936_v4  ;;  %v3176_v22 = vpack.c.bf16 (%p1568_p2), %v2147_v19, %v2146_v15 }
 0xb44   : > { %v3369_v42 = vpop.eup %3368 }
 0xb45   : > { %v1682_v43 = vmul.f32 0.5, %v3369_v42  ;;  %v3371_v45 = vpop.eup %3370 }
 0xb47   : > { %v1683_v44 = vadd.f32 0.5, %v1682_v43 }
 0xb49   : > { %v1697_v47 = vmul.f32 %v3371_v45, %v1683_v44  ;;  %v1696_v49 = vmul.f32 %v1683_v44, %v1577_v48  ;;  %v1981_v48 = vld [vmem:[#allocation34 + $0x8] sm:$0xff] (%p1568_p2) }
 0xb4b   : > { %1699 = vrot.lane.b32.xlu0 %v1697_v47, %s3944_s14  ;;  %v1980_v47 = vld [vmem:[#allocation34] sm:$0xff] (%p1568_p2) }
 0xb4f   : > { %1688 = vrot.lane.b32.xlu0 %v1679_v59, %s3944_s14 }
 0xb53   :  { %1804 = vperm.xlu0 (%p1568_p2), %3376, %v1802_v54   ;;  %v1992_v54 = vld [vmem:[#allocation34 + $0x60] sm:$0xff] (%p1568_p2) }
 0xb54   :  { %v3146_v56 = vpack.c.bf16 (%p1568_p2), %v1993_v55, %v1992_v54 }
 0xb57   :  { %1811 = vperm.xlu0 (%p1568_p2), %3376, %v1809_v57   ;;  %v1994_v57 = vld [vmem:[#allocation34 + $0x70] sm:$0xff] (%p1568_p2) }
 0xb58   :  { %v3149_v14 = vpack.c.bf16 (%p1568_p2), %v1995_v58, %v1994_v57  ;;  %v2401_v57 = vld [vmem:[%s4117_s17 + $0x38] sm:$0xff] (%p1568_p2)  ;;  %v2418_v58 = vld [vmem:[%s4117_s17 + $0xc0] sm:$0xff] (%p1568_p2) }
 0xbbd   : > { %v1700_v50 = vpop.permute.xlu0 %1699 }
 0xbbe   : > { %v1702_v62 = vadd.f32 %v1700_v50, %v1696_v49   ;;  %v3128_v49 = vpack.c.bf16 (%p1568_p2), %v1981_v48, %v1980_v47  ;;  %v1982_v50 = vld [vmem:[#allocation34 + $0x10] sm:$0xff] (%p1568_p2) }
 0xbbf   :  { %v2144_v48 = vld [vmem:[%s4774_s23] sm:$0xff] (%p1568_p2) }
 0xbc0   : > { %3372 = vtanh.f32 %v1702_v62  ;;  %v1969_v62 = vld [vmem:[%s4772_s2 + $0x28] sm:$0xff] (%p1568_p2) }
 0xbc1   : > { %v1689_v52 = vpop.permute.xlu0 %1688 }
 0xbc2   : > { %v1690_v53 = vrot.slane %v1689_v52, 1 }
 0xbc4   : > { %v1692_v28 = vmul.f32 0.5, %v1690_v53 }
 0xbc6   : > { %3374 = vtanh.f32 %v1692_v28  ;;  %v1984_v28 = vld [vmem:[#allocation34 + $0x20] sm:$0xff] (%p1568_p2) }
 0xbca   : > { %v3373_v51 = vpop.eup %3372 }
 0xbcb   : > { %1705 = vrot.lane.b32.xlu1 %v3373_v51, %s3944_s14  ;;  %v1983_v51 = vld [vmem:[#allocation34 + $0x18] sm:$0xff] (%p1568_p2) }
 0xbcc   :  { %v3131_v53 = vpack.c.bf16 (%p1568_p2), %v1983_v51, %v1982_v50  ;;  %v2410_v50 = vld [vmem:[%s4117_s17 + $0x80] sm:$0xff] (%p1568_p2)  ;;  %v2411_v51 = vld [vmem:[%s4117_s17 + $0x88] sm:$0xff] (%p1568_p2) }
 0xbd0   : > { %v3375_v30 = vpop.eup %3374 }
 0xbd1   : > { %v1694_v31 = vmul.f32 0.5, %v3375_v30  ;;  %v1985_v30 = vld [vmem:[#allocation34 + $0x28] sm:$0xff] (%p1568_p2) }
 0xbd2   :  { %v1805_v59 = vpop.permute.xlu0 (%p1568_p2), %1804 }
 0xbd3   : > { %v1695_v32 = vadd.f32 0.5, %v1694_v31  ;;  %vm1806_vm12 = vcmp.eq.s32.totalorder (%p1568_p2), %v4448_v5, %v1805_v59  ;;  %v3134_v31 = vpack.c.bf16 (%p1568_p2), %v1985_v30, %v1984_v28  ;;  %v3199_v28 = vpack.c.bf16 (%p1568_p2), %v2411_v51, %v2410_v50  ;;  %v2395_v30 = vld [vmem:[%s4117_s17 + $0x8] sm:$0xff] (%p1568_p2) }
 0xbd4   :  { %v4625_v42 = vsel (%p1568_p2), %vm1806_vm12, 1.0, %v3939_v6 }
 0xbd6   :  { %v1812_v45 = vpop.permute.xlu0 (%p1568_p2), %1811 }
 0xbd7   :  { %vm1813_vm14 = vcmp.eq.s32.totalorder (%p1568_p2), %v4448_v5, %v1812_v45 }
 0xbd8   :  { %v4635_v52 = vsel (%p1568_p2), %vm1813_vm14, 1.0, %v3939_v6 }
 0xc3a   :  { %1570 = sbr.rel (!%p1568_p2) target bundleno = 2633 (0xa49), region = 295 }
 0xc3d   : > { %v1706_v33 = vpop.permute.xlu1 %1705 }
 0xc3e   : > { %v1708_v63 = vmul.f32 %v1706_v33, %v1695_v32   ;;  %v1986_v32 = vld [vmem:[#allocation34 + $0x30] sm:$0xff] (%p1568_p2)  ;;  %v1987_v33 = vld [vmem:[#allocation34 + $0x38] sm:$0xff] (%p1568_p2) }
 0xc3f   :  { %v3137_v34 = vpack.c.bf16 (%p1568_p2), %v1987_v33, %v1986_v32  ;;  %v2396_v33 = vld [vmem:[%s4117_s17 + $0x10] sm:$0xff] (%p1568_p2) }
 0xc40   : > { %1711 = vst.msk [vmem:[%s1709_s0] sm:$0x1] %vm1091_vm8, %v1708_v63  ;;  %v3158_v63 = vpack.c.bf16 (%p1568_p2), %v1969_v62, %v1968_v27  ;;  %v2150_v62 = vld [vmem:[%s4773_s7 + $0x20] sm:$0xff] (%p1568_p2) }
 0xc47   :  { %v1712_v21 = vld [vmem:[#allocation6] sm:$0xff] }
 0xc48   :  { %2832 = vmatmul.mubr.msk.f32.vlgmr.msra.gmra.mrb[0].mxu0 %vm734_vm7, %v1712_v21 }
 0xc49   :  { %2911 = vmatprep.mubr.msk.f32.mxu0 %vm3938_vm4, %v3939_v6  ;;  %3153 = vmatpush3.bf16.msra.mxu0 %v3152_v23  ;;  %v2148_v23 = vld [vmem:[%s4773_s7 + $0x10] sm:$0xff] }
 0xc4a   :  { %3154 = vmatprep.subr.bf16.mxu0 %v3936_v4  ;;  %v3179_v27 = vpack.c.bf16 %v2149_v24, %v2148_v23  ;;  %v2421_v23 = vld [vmem:[%s4117_s17 + $0xd8] sm:$0xff] }
 0xc4d   :  { %3156 = vmatpush3.bf16.msra.mxu0 %v3155_v26 }
 0xc4e   :  { %3157 = vmatprep.subr.bf16.mxu0 %v3936_v4 }
 0xc51   :  { %3159 = vmatpush3.bf16.msra.mxu0 %v3158_v63  ;;  %v2151_v63 = vld [vmem:[%s4773_s7 + $0x28] sm:$0xff] }
 0xc52   :  { %3160 = vmatprep.subr.bf16.mxu0 %v3936_v4  ;;  %v3182_v20 = vpack.c.bf16 %v2151_v63, %v2150_v62  ;;  %v2422_v62 = vld [vmem:[%s4117_s17 + $0xe0] sm:$0xff]  ;;  %v2423_v63 = vld [vmem:[%s4117_s17 + $0xe8] sm:$0xff] }
 0xc55   :  { %3162 = vmatpush3.bf16.msra.mxu0 %v3161_v1  ;;  %v2153_v1 = vld [vmem:[%s4773_s7 + $0x38] sm:$0xff] }
 0xc56   :  { %3163 = vmatprep.subr.bf16.mxu0 %v3936_v4  ;;  %v3185_v2 = vpack.c.bf16 %v2153_v1, %v2152_v0  ;;  %v3223_v0 = vpack.c.bf16 %v2423_v63, %v2422_v62  ;;  %v2406_v1 = vld [vmem:[%s4117_s17 + $0x60] sm:$0xff] }
 0xc59   :  { %3165 = vmatpush3.bf16.msra.mxu0 %v3164_v8  ;;  %v2155_v8 = vld [vmem:[%s4773_s7 + $0x48] sm:$0xff] }
 0xc5a   :  { %3166 = vmatprep.subr.bf16.mxu0 %v3936_v4  ;;  %v3188_v9 = vpack.c.bf16 %v2155_v8, %v2154_v7  ;;  %v2424_v7 = vld [vmem:[%s4117_s17 + $0xf0] sm:$0xff]  ;;  %v2425_v8 = vld [vmem:[%s4117_s17 + $0xf8] sm:$0xff] }
 0xc5d   :  { %3168 = vmatpush3.bf16.msra.mxu0 %v3167_v11  ;;  %v2157_v11 = vld [vmem:[%s4773_s7 + $0x58] sm:$0xff] }
 0xc5e   :  { %3169 = vmatprep.subr.bf16.mxu0 %v3936_v4  ;;  %v3191_v12 = vpack.c.bf16 %v2157_v11, %v2156_v10  ;;  %v3227_v10 = vpack.c.bf16 %v2425_v8, %v2424_v7  ;;  %v2408_v11 = vld [vmem:[%s4117_s17 + $0x70] sm:$0xff] }
 0xc61   :  { %3171 = vmatpush3.bf16.msra.mxu0 %v3170_v29  ;;  %v2159_v29 = vld [vmem:[%s4773_s7 + $0x68] sm:$0xff] }
 0xc62   :  { %3172 = vmatprep.subr.bf16.mxu0 %v3936_v4  ;;  %v3194_v36 = vpack.c.bf16 %v2159_v29, %v2158_v13 }
 0xc65   :  { %3174 = vmatpush3.bf16.msra.mxu0 %v3173_v38  ;;  %v2161_v38 = vld [vmem:[%s4773_s7 + $0x78] sm:$0xff] }
 0xc66   :  { %v3197_v59 = vpack.c.bf16 %v2161_v38, %v2160_v16  ;;  %3200 = vmatprep.subr.bf16.mxu0 %v3199_v28 }
 0xd1b   :  { %v1797_v41 = vpop.f32.mrb[0].mxu0 }
 0xd1c   :  { %v1798_v43 = vadd.f32 %v2622_v39, %v1797_v41  ;;  %v2833_v44 = vpop.f32.mrb[1].mxu0 }
 0xd1d   :  { %v2628_v44 = vld [vmem:[#allocation35] ss:$0 sm:$0xff] }
 0xd1e   :  { %2835 = vmatpush3.msra.mxu1 %v1798_v43 }
 0xd1f   :  { %2837 = vmatmul.mubr.msk.f32.vlgmr.msra.gmra.mrb[0].mxu1 %vm1817_vm13, %v4625_v42  ;;  %2839 = vmatprep.subr.mxu1 %v3939_v6 }
 0xd20   :  { %2840 = vmatpush3.msra.mxu1 %v1798_v43  ;;  %2841 = vmatprep.mubr.msk.f32.mxu1 %vm3938_vm4, %v3939_v6 }
 0xd21   :  { %3127 = vmatprep.subr.bf16.mxu1 %v3936_v4 }
 0xd23   :  { %2842 = vmatmul.mubr.msk.f32.vlgmr.msra.gmra.mrb[2].mxu1 %vm1817_vm13, %v4635_v52 }
 0xd24   :  { %3129 = vmatpush3.bf16.msra.mxu1 %v3128_v49  ;;  %2876 = vmatprep.mubr.msk.f32.mxu1 %vm3938_vm4, %v3939_v6 }
 0xd25   :  { %3130 = vmatprep.subr.bf16.mxu1 %v3936_v4 }
 0xd28   :  { %3132 = vmatpush3.bf16.msra.mxu1 %v3131_v53  ;;  %v2394_v53 = vld [vmem:[%s4117_s17] sm:$0xff] }
 0xd29   :  { %3133 = vmatprep.subr.bf16.mxu1 %v3936_v4  ;;  %v3201_v32 = vpack.c.bf16 %v2395_v30, %v2394_v53 }
 0xd2c   :  { %3135 = vmatpush3.bf16.msra.mxu1 %v3134_v31  ;;  %v2412_v31 = vld [vmem:[%s4117_s17 + $0x90] sm:$0xff] }
 0xd2d   :  { %3136 = vmatprep.subr.bf16.mxu1 %v3936_v4 }
 0xd30   :  { %3138 = vmatpush3.bf16.msra.mxu1 %v3137_v34  ;;  %v2397_v34 = vld [vmem:[%s4117_s17 + $0x18] sm:$0xff] }
 0xd31   :  { %3139 = vmatprep.subr.bf16.mxu1 %v3936_v4  ;;  %v3205_v35 = vpack.c.bf16 %v2397_v34, %v2396_v33 }
 0xd34   :  { %3141 = vmatpush3.bf16.msra.mxu1 %v3140_v61  ;;  %v2398_v61 = vld [vmem:[%s4117_s17 + $0x20] sm:$0xff] }
 0xd35   :  { %3142 = vmatprep.subr.bf16.mxu1 %v3936_v4  ;;  %v3209_v54 = vpack.c.bf16 %v2399_v17, %v2398_v61 }
 0xd38   :  { %3144 = vmatpush3.bf16.msra.mxu1 %v3143_v46  ;;  %v2417_v46 = vld [vmem:[%s4117_s17 + $0xb8] sm:$0xff] }
 0xd39   :  { %3145 = vmatprep.subr.bf16.mxu1 %v3936_v4  ;;  %v3211_v55 = vpack.c.bf16 %v2417_v46, %v2416_v18 }
 0xd3c   :  { %3147 = vmatpush3.bf16.msra.mxu1 %v3146_v56  ;;  %v2400_v56 = vld [vmem:[%s4117_s17 + $0x30] sm:$0xff] }
 0xd3d   :  { %3148 = vmatprep.subr.bf16.mxu1 %v3936_v4  ;;  %v3213_v15 = vpack.c.bf16 %v2401_v57, %v2400_v56 }
 0xd40   :  { %3150 = vmatpush3.bf16.msra.mxu1 %v3149_v14  ;;  %v2419_v14 = vld [vmem:[%s4117_s17 + $0xc8] sm:$0xff] }
 0xd41   :  { %3175 = vmatprep.subr.bf16.mxu1 %v3936_v4  ;;  %v3215_v19 = vpack.c.bf16 %v2419_v14, %v2418_v58 }
 0xdf2   :  { %v1887_v21 = vpop.f32.mrb[0].mxu1 }
 0xdf3   :  { %v2838_v3 = vpop.f32.mrb[1].mxu1  ;;  %2912 = vmatmul.mubr.f32.vlgmr.msra.gmra.mrb[2].mxu0 %v1887_v21  ;;  %v2402_v21 = vld [vmem:[%s4117_s17 + $0x40] sm:$0xff] }
 0xdf4   :  { %3202 = vmatpush3.bf16.msra.mxu0 %v3201_v32  ;;  %v2403_v3 = vld [vmem:[%s4117_s17 + $0x48] sm:$0xff] }
 0xdf5   :  { %v3217_v24 = vpack.c.bf16 %v2403_v3, %v2402_v21 }
 0xdf6   :  { %v1960_v25 = vpop.f32.mrb[2].mxu1 }
 0xdf7   :  { %v2843_v26 = vpop.f32.mrb[3].mxu1  ;;  %2877 = vmatmul.mubr.f32.vlgmr.msra.gmra.mrb[4].mxu1 %v1960_v25 }
 0xdf8   :  { %3177 = vmatpush3.bf16.msra.mxu1 %v3176_v22  ;;  %2946 = vmatprep.mubr.msk.f32.mxu1 %vm3938_vm4, %v3939_v6  ;;  %v2420_v22 = vld [vmem:[%s4117_s17 + $0xd0] sm:$0xff] }
 0xdf9   :  { %3178 = vmatprep.subr.bf16.mxu1 %v3936_v4  ;;  %v3219_v25 = vpack.c.bf16 %v2421_v23, %v2420_v22  ;;  %v2404_v26 = vld [vmem:[%s4117_s17 + $0x50] sm:$0xff] }
 0xdfc   :  { %3180 = vmatpush3.bf16.msra.mxu1 %v3179_v27  ;;  %v2405_v27 = vld [vmem:[%s4117_s17 + $0x58] sm:$0xff] }
 0xdfd   :  { %3181 = vmatprep.subr.bf16.mxu1 %v3936_v4 }
 0xe00   :  { %3183 = vmatpush3.bf16.msra.mxu1 %v3182_v20  ;;  %v3221_v20 = vpack.c.bf16 %v2405_v27, %v2404_v26 }
 0xe01   :  { %3184 = vmatprep.subr.bf16.mxu1 %v3936_v4 }
 0xe04   :  { %3186 = vmatpush3.bf16.msra.mxu1 %v3185_v2  ;;  %v2407_v2 = vld [vmem:[%s4117_s17 + $0x68] sm:$0xff] }
 0xe05   :  { %3187 = vmatprep.subr.bf16.mxu1 %v3936_v4 }
 0xe08   :  { %3189 = vmatpush3.bf16.msra.mxu1 %v3188_v9  ;;  %v3225_v9 = vpack.c.bf16 %v2407_v2, %v2406_v1 }
 0xe09   :  { %3190 = vmatprep.subr.bf16.mxu1 %v3936_v4 }
 0xe0c   :  { %3192 = vmatpush3.bf16.msra.mxu1 %v3191_v12  ;;  %v2409_v12 = vld [vmem:[%s4117_s17 + $0x78] sm:$0xff] }
 0xe0d   :  { %3193 = vmatprep.subr.bf16.mxu1 %v3936_v4  ;;  %v3229_v13 = vpack.c.bf16 %v2409_v12, %v2408_v11 }
 0xe10   :  { %3195 = vmatpush3.bf16.msra.mxu1 %v3194_v36 }
 0xe11   :  { %3196 = vmatprep.subr.bf16.mxu1 %v3936_v4 }
 0xe14   :  { %3198 = vmatpush3.bf16.msra.mxu1 %v3197_v59 }
 0xe15   :  { %2949 = vmatprep.subr.mxu1 %v3939_v6 }
 0xec6   :  { %v2132_v39 = vpop.f32.mrb[2].mxu0 }
 0xec7   :  { %v2913_v41 = vpop.f32.mrb[3].mxu0 }
 0xeca   :  { %v2062_v43 = vpop.f32.mrb[4].mxu1 }
 0xecb   :  { %v2133_v45 = vadd.f32 %v2132_v39, %v2062_v43  ;;  %v2878_v47 = vpop.f32.mrb[5].mxu1 }
 0xecd   :  { %v2143_v49 = vadd.f32 %v2628_v44, %v2133_v45  ;;  %v2381_v44 = vadd.s32 128, %v4448_v5 }
 0xecf   :  { %v2145_v4 = vmul.f32 %v2144_v48, %v2143_v49  ;;  %v2382_v45 = vcvt.s32.f32 %v2381_v44  ;;  %v3946_v48 = vmov 1.0  }
 0xed1   :  { %2947 = vmatmul.mubr.f32.vlgmr.msra.gmra.mrb[6].mxu1 %v2145_v4 }
 0xed2   :  { %2950 = vmatpush3.msra.mxu1 %v4458_v40  ;;  %2951 = vmatprep.mubr.msk.f32.mxu1 %vm3938_vm4, %v3939_v6 }
 0xed3   :  { %2954 = vmatprep.subr.mxu1 %v3939_v6 }
 0xed5   :  { %2952 = vmatmul.mubr.msk.f32.vlgmr.msra.gmra.mrb[8].mxu1 %vm1817_vm13, %v4625_v42  ;;  %v2413_v42 = vld [vmem:[%s4117_s17 + $0x98] sm:$0xff] }
 0xed6   :  { %2955 = vmatpush3.msra.mxu1 %v4458_v40  ;;  %2956 = vmatprep.mubr.msk.f32.mxu1 %vm3938_vm4, %v3939_v6  ;;  %v3203_v40 = vpack.c.bf16 %v2413_v42, %v2412_v31  ;;  %v2414_v6 = vld [vmem:[%s4117_s17 + $0xa0] sm:$0xff] }
 0xed8   :  { %3204 = vmatprep.subr.bf16.mxu0 %v3203_v40 }
 0xed9   :  { %2957 = vmatmul.mubr.msk.f32.vlgmr.msra.gmra.mrb[10].mxu1 %vm1817_vm13, %v4635_v52  ;;  %v2415_v52 = vld [vmem:[%s4117_s17 + $0xa8] sm:$0xff]  ;;  %3206 = vmatpush3.bf16.msra.mxu0 %v3205_v35  ;;  %s3947_s17 = smov [#allocation38]  }
 0xeda   :  { %v3207_v60 = vpack.c.bf16 %v2415_v52, %v2414_v6  ;;  %s2505_s26 = sshll.u32 %s3947_s17, 4  ;;  %s2506_s26 = int_to_ptr.vmem [resolvable:$true] %s2505_s26 }
 0xedb   :  { %s3764_s28 = scalar_lea.vmem %s2506_s26, 128  ;;  %p3769_p4 = scmp.lt.s32.totalorder %s2506_s26, %s2506_s26 }
 0xedc   :  { %3208 = vmatprep.subr.bf16.mxu0 %v3207_v60  ;;  %p3765_p3 = scmp.ne.s32.totalorder %s2506_s26, %s3764_s28  ;;  %p3770_p5 = scmp.lt.s32.totalorder %s3764_s28, %s3764_s28 }
 0xedd   :  { %3210 = vmatpush3.bf16.msra.mxu0 %v3209_v54 }
 0xede   :  { %3212 = vmatprep.subr.bf16.mxu0 %v3211_v55  ;;  %p3771_p6 = por %p3770_p5, %p3769_p4 }
 0xee0   :  { %p3772_p7 = pnand %p3771_p6, %p3765_p3 }
 0xee1   :  { %3214 = vmatpush3.bf16.msra.mxu0 %v3213_v15 }
 0xee2   :  { %3216 = vmatprep.subr.bf16.mxu0 %v3215_v19 }
 0xee5   :  { %3218 = vmatpush3.bf16.msra.mxu0 %v3217_v24 }
 0xee6   :  { %3220 = vmatprep.subr.bf16.mxu0 %v3219_v25 }
 0xee9   :  { %3222 = vmatpush3.bf16.msra.mxu0 %v3221_v20 }
 0xeea   :  { %3224 = vmatprep.subr.bf16.mxu0 %v3223_v0 }
 0xeed   :  { %3226 = vmatpush3.bf16.msra.mxu0 %v3225_v9 }
 0xeee   :  { %3228 = vmatprep.subr.bf16.mxu0 %v3227_v10 }
 0xef1   :  { %3230 = vmatpush3.bf16.msra.mxu0 %v3229_v13 }
 0xfa4   :  { %v2235_v29 = vpop.f32.mrb[6].mxu1 }
 0xfa5   :  { %v2948_v36 = vpop.f32.mrb[7].mxu1 }
 0xfa8   :  { %v2305_v16 = vpop.f32.mrb[8].mxu1 }
 0xfa9   :  { %v2953_v38 = vpop.f32.mrb[9].mxu1  ;;  %v2379_v59 = vmul.f32 16.0, %v2305_v16 }
 0xfac   :  { %v2375_v39 = vpop.f32.mrb[10].mxu1 }
 0xfad   :  { %v2380_v41 = vadd.f32 %v2379_v59, %v2375_v39  ;;  %v2958_v43 = vpop.f32.mrb[11].mxu1 }
 0xfaf   :  { %2385 = vperm.xlu1 %3377, %v2380_v41  }
0x102e   :  { %v2386_v47 = vpop.permute.xlu1 %2385 }
0x102f   :  { %vm2388_vm15 = vcmp.eq.f32.partialorder %v4454_v37, %v2386_v47  ;;  %vm2389_vm0 = vcmp.eq.f32.partialorder %v2382_v45, %v2386_v47 }
0x1030   :  { %2634 = vmatprep.mubr.msk.f32.mxu0 %vm2389_vm0, %v3946_v48 }
0x1031   :  { %2635 = vmatmul.mubr.msk.f32.vlgmr.msra.gmra.mrb[4].mxu0 %vm2388_vm15, %v3946_v48 }
0x1032   :  { %3775 = shalt.err (!%p3772_p7)
}
0x1033   :  { %s3776_s24 = scalar_lea.hbm %s4122_s9, 128 }
0x1034   :  { %p3777_p8 = scmp.ne.s32.totalorder %s4122_s9, %s3776_s24  ;;  %p3780_p9 = scmp.lt.u32.totalorder %s3776_s24, %s4122_s9 }
0x1036   :  { %p3782_p10 = pnand %p3780_p9, %p3777_p8 }
0x1038   :  { %3785 = shalt.err (!%p3782_p10)
}
0x1039   :  { %2508 = dma.vmem_to_hbm [thread:$0]  %s2506_s26, 128, %s4122_s9, [#allocation11]   ;;  %v2629_v5 = vld [vmem:[#allocation37] ss:$0 sm:$0xff]  ;;  %vm2497_vm1 = vcmask 80896  }
0x103a   :  { %s3948_s20 = smov [#allocation39]   ;;  %v2236_v4 = vadd.f32 %v2629_v5, %v2235_v29 }
0x103b   :  { %s2515_s27 = sshll.u32 %s3948_s20, 4  ;;  %s2516_s27 = int_to_ptr.vmem [resolvable:$true] %s2515_s27 }
0x103c   :  { %s3786_s5 = scalar_lea.vmem %s2516_s27, 128  ;;  %p3791_p12 = scmp.lt.s32.totalorder %s2516_s27, %s2516_s27 }
0x103d   :  { %p3787_p11 = scmp.ne.s32.totalorder %s2516_s27, %s3786_s5  ;;  %p3792_p13 = scmp.lt.s32.totalorder %s3786_s5, %s3786_s5 }
0x103f   :  { %p3793_p0 = por %p3792_p13, %p3791_p12 }
0x1041   :  { %p3794_p1 = pnand %p3793_p0, %p3787_p11 }
0x1104   :  { %v2761_v37 = vpop.f32.mrb[4].mxu0 }
0x1105   :  { %v2762_v49 = vpop.f32.mrb[5].mxu0 }
0x1106   :  { %v2763_v50 = vadd.f32 %v2762_v49, %v2761_v37 }
0x1108   :  { %v2496_v51 = vadd.f32 %v2763_v50, %v2236_v4 }
0x110a   :  { %2498 = vst.msk [vmem:[#allocation39] sm:$0xff] %vm2497_vm1, %v2496_v51 }
0x110b   :  { %3797 = shalt.err (!%p3794_p1)
}
0x110c   :  { %s3798_s9 = scalar_lea.hbm %s4127_s4, 128 }
0x110d   :  { %p3799_p2 = scmp.ne.s32.totalorder %s4127_s4, %s3798_s9  ;;  %p3802_p3 = scmp.lt.u32.totalorder %s3798_s9, %s4127_s4 }
0x110f   :  { %p3804_p4 = pnand %p3802_p3, %p3799_p2 }
0x1111   :  { %3807 = shalt.err (!%p3804_p4)
}
0x1112   :  { %2518 = dma.vmem_to_hbm [thread:$0]  %s2516_s27, 128, %s4127_s4, [#allocation40]  }
0x1113   :  { %3852 = dma.done.wait [#allocation11], 128  }
0x1114   :  { %3853 = vsyncadd [#allocation11], 4294967168 }
0x1115   :  { %3854 = dma.done.wait [#allocation40], 128  }
0x1116   :  { %3855 = vsyncadd [#allocation40], 4294967168 }
0x1117   :  { %2525 = vsyncpa [#allocation10], 1 }
0x1118   :  { %2526 = vsyncpa [#allocation15], 1 }
0x1119   :  { %2527 = vsyncpa [#allocation18], 1 }
0x111a   :  { %2528 = vsyncpa [#allocation21], 1 }
0x111b   :  { %2529 = vsyncpa [#allocation24], 1 }
0x111c   :  { %2530 = vsyncpa [#allocation27], 1 }
0x111d   :  { %2531 = vsyncpa [#allocation30], 1 }
0x111e   :  { %2532 = vsyncpa [#allocation33], 1 }
0x111f   :  { %2533 = vsyncpa [#allocation36], 1 }
0x1120   :  { %2534 = vsyncpa [#allocation11], 1 }
0x1121   :  { %2535 = vsyncpa [#allocation40], 1 }
0x1122   :  { %2536 = vsyncpa [#allocation12], 1 }

</bundles_post_ra>
